<compile_context>
chip_gen: v5e
topology: v5e:2x2
jax: 0.10.0
libtpu: 0.0.40
codegen_flags: <defaults>
</compile_context>

<pallas_src>
import functools

import jax
import jax.numpy as jnp
from jax.experimental import pallas as pl
from jax.experimental.pallas import tpu as pltpu


def _round_up(a, b):
    return (a + b - 1) // b * b


def _slstm_kernel(h_ref, x_ref, hslot_ref, hintent_ref, c_ref,
                  hprev_ref, hnext_ref, cprev_ref, cnext_ref,
                  w_ref, b_ref,
                  h_out_ref, c_out_ref):
    # Block shapes:
    #   h/x/h_slot/h_intent/c : (1, TL, Hp)    one L-tile of one sentence (f32)
    #   h/c prev/next halos   : (1, 1, 1, Hp)  boundary row for this tile (f32)
    #   w                     : (6Hp, 6Hp)     bf16; rows = [mid,left,right,x,slot,intent]
    #                                          cols = [i,o,f,l,r,u]  (Hp each)
    #   b                     : (1, 6Hp)       f32
    TL = h_out_ref.shape[1]
    Hp = h_out_ref.shape[2]

    h_mid = h_ref[0]                    # (TL, Hp)
    c_mid = c_ref[0]
    x_in = x_ref[0]
    h_slot = hslot_ref[0]
    h_intent = hintent_ref[0]

    h_prev_row = hprev_ref[0, 0]        # (1, Hp) token just before this tile
    h_next_row = hnext_ref[0, 0]        # (1, Hp) token just after this tile
    c_prev_row = cprev_ref[0, 0]
    c_next_row = cnext_ref[0, 0]

    # (TL, 1) boundary masks; broadcast across lanes inside the selects.
    row = jax.lax.broadcasted_iota(jnp.int32, (TL, 1), 0)
    is_first = row == 0
    is_last = row == TL - 1

    # +/-1 token shifts on the XLU (pltpu.roll) with a halo-row fix at the
    # tile boundary.  "left" = previous token (zero pad at sentence start),
    # "right" = next token (zero pad at sentence end), as in the reference.
    def shift_left(v, prev_row):
        return jnp.where(is_first, prev_row, pltpu.roll(v, shift=1, axis=0))

    def shift_right(v, next_row):
        return jnp.where(is_last, next_row, pltpu.roll(v, shift=TL - 1, axis=0))

    h_left = shift_left(h_mid, h_prev_row)
    h_right = shift_right(h_mid, h_next_row)
    c_left = shift_left(c_mid, c_prev_row)
    c_right = shift_right(c_mid, c_next_row)

    # Single fused K=6Hp matmul against the VMEM-resident weight: bf16 MXU
    # operands, f32 accumulation.  No per-component accumulator RMW passes.
    z = jnp.concatenate(
        [h_mid, h_left, h_right, x_in, h_slot, h_intent], axis=1
    ).astype(jnp.bfloat16)
    g = jnp.dot(z, w_ref[...], preferred_element_type=jnp.float32) + b_ref[...]

    # Gate slices are Hp-aligned (Hp is a multiple of 128) -> whole-vreg ops.
    i_t = jax.nn.sigmoid(g[:, 0 * Hp:1 * Hp])
    o_t = jax.nn.sigmoid(g[:, 1 * Hp:2 * Hp])
    f_t = jax.nn.sigmoid(g[:, 2 * Hp:3 * Hp])
    l_t = jax.nn.sigmoid(g[:, 3 * Hp:4 * Hp])
    r_t = jax.nn.sigmoid(g[:, 4 * Hp:5 * Hp])
    u_t = jnp.tanh(g[:, 5 * Hp:6 * Hp])

    # Softmax over {i, f, l, r} folded into the cell update.  Sigmoid outputs
    # lie in (0, 1) so exp cannot overflow -> no max shift needed.  Exact
    # reciprocal: one EUP op per tile, off the MXU critical path.
    ei = jnp.exp(i_t)
    ef = jnp.exp(f_t)
    el = jnp.exp(l_t)
    er = jnp.exp(r_t)
    inv_denom = 1.0 / (ei + ef + el + er)

    c_new = (ef * c_mid + el * c_left + er * c_right + ei * u_t) * inv_denom
    c_out_ref[0] = c_new
    h_out_ref[0] = o_t * jnp.tanh(c_new)


@functools.partial(jax.jit, static_argnames=("tile_l",))
def slstm_cell_forward(h_t, x, h_slot, h_intent, c_t, w_all, b_all, *,
                       tile_l=512):
    """Pallas implementation of SLSTMCell.forward.

    h_t, x, h_slot, h_intent, c_t : (B, L, H) float32
    w_all : (6H, 6H) fused gate weights; rows blocked by input component
            [h_mid, h_left, h_right, x, h_slot, h_intent], columns blocked by
            gate [i, o, f, l, r, u] (column block g == gate_g.weight.T)
    b_all : (6H,) fused biases, gate order [i, o, f, l, r, u]
    Returns (h_new, c_new), each (B, L, H).
    """
    B, L, H = h_t.shape
    Hp = _round_up(H, 128)                 # lane-align each gate block
    TL = min(tile_l, _round_up(L, 8))      # rows per grid step
    # Prefer a tile length that divides L exactly: when it does (and H is
    # already lane-aligned) the five (B, L, H) inputs stream into the kernel
    # with no wrapper-side jnp.pad copies.
    if L % TL != 0 and L % 8 == 0:
        divs = [d for d in range(8, TL + 1, 8) if L % d == 0]
        if divs and divs[-1] * 4 >= TL:
            TL = divs[-1]
    Lp = _round_up(L, TL)
    NT = Lp // TL

    def pad_state(a):
        if Lp == L and Hp == H:
            return a
        # Zero rows appended along L keep the "zero neighbour at the sentence
        # end" semantics; zero lanes along H are sliced away at the end.
        return jnp.pad(a, ((0, 0), (0, Lp - L), (0, Hp - H)))

    h_p = pad_state(h_t)
    x_p = pad_state(x)
    hs_p = pad_state(h_slot)
    hi_p = pad_state(h_intent)
    c_p = pad_state(c_t)

    if Hp == H:
        w_p = w_all
        b_p = b_all.reshape(1, 6 * H)
    else:
        w_p = jnp.pad(
            w_all.reshape(6, H, 6, H),
            ((0, 0), (0, Hp - H), (0, 0), (0, Hp - H))).reshape(6 * Hp, 6 * Hp)
        b_p = jnp.pad(b_all.reshape(6, H),
                      ((0, 0), (0, Hp - H))).reshape(1, 6 * Hp)
    # bf16 MXU operands (f32 accumulation in-kernel); halves the resident
    # weight's VMEM/HBM footprint.  Bias / elementwise path stays f32.
    w_p = w_p.astype(jnp.bfloat16)
    b_p = b_p.astype(jnp.float32)

    # Per-tile halo rows: token immediately before / after each L-tile (zeros
    # at sentence boundaries).  Shaped (B, NT, 1, Hp) so each grid step DMAs
    # exactly one lane-aligned row.
    zrow = jnp.zeros((B, 1, Hp), dtype=h_p.dtype)

    def halo_prev(a):
        return jnp.concatenate(
            [zrow, a[:, TL - 1::TL, :][:, :NT - 1]], axis=1).reshape(B, NT, 1, Hp)

    def halo_next(a):
        return jnp.concatenate(
            [a[:, ::TL, :][:, 1:], zrow], axis=1).reshape(B, NT, 1, Hp)

    h_prev = halo_prev(h_p)
    h_next = halo_next(h_p)
    c_prev = halo_prev(c_p)
    c_next = halo_next(c_p)

    tile_spec = pl.BlockSpec((1, TL, Hp), lambda b, t: (b, t, 0))
    halo_spec = pl.BlockSpec((1, 1, 1, Hp), lambda b, t: (b, t, 0, 0))
    w_spec = pl.BlockSpec((6 * Hp, 6 * Hp), lambda b, t: (0, 0))   # VMEM-resident
    bias_spec = pl.BlockSpec((1, 6 * Hp), lambda b, t: (0, 0))

    # Explicit scoped-VMEM budget (defaults: 16 MiB v5e / 32 MiB v6e, v7x).
    vmem_limit = int(min(
        2 * (6 * Hp) * (6 * Hp) * 2          # fused bf16 weight (x2 buffers)
        + 2 * 2 * (6 * Hp) * 4               # bias
        + 7 * 2 * TL * Hp * 4                # 5 in + 2 out f32 tiles, x2 buffers
        + 4 * 2 * 8 * Hp * 4                 # halo rows (sublane padded)
        + TL * 6 * Hp * 6                    # z (bf16) + g (f32) scratch
        + 16 * TL * Hp * 4                   # gate / shift / update temporaries
        + (4 << 20),                         # slack
        100 * 1024 * 1024))

    grid_spec = pltpu.PrefetchScalarGridSpec(
        num_scalar_prefetch=0,
        grid=(B, NT),
        in_specs=[tile_spec] * 5 + [halo_spec] * 4 + [w_spec, bias_spec],
        out_specs=[tile_spec, tile_spec],
    )

    h_new, c_new = pl.pallas_call(
        _slstm_kernel,
        out_shape=(jax.ShapeDtypeStruct((B, Lp, Hp), jnp.float32),
                   jax.ShapeDtypeStruct((B, Lp, Hp), jnp.float32)),
        grid_spec=grid_spec,
        compiler_params=pltpu.CompilerParams(
            dimension_semantics=("parallel", "parallel"),
            vmem_limit_bytes=vmem_limit),
    )(h_p, x_p, hs_p, hi_p, c_p, h_prev, h_next, c_prev, c_next, w_p, b_p)

    if Lp != L or Hp != H:
        h_new = h_new[:, :L, :H]
        c_new = c_new[:, :L, :H]
    return h_new, c_new


def _reference_forward(h_t, x, h_slot, h_intent, c_t, gate_weights,
                       gate_biases):
    """Pure-JAX reference mirroring the PyTorch module semantics."""
    B, L, H = h_t.shape
    pad = jnp.zeros((B, 1, H), dtype=h_t.dtype)
    h_left = jnp.concatenate([pad, h_t[:, :L - 1, :]], axis=1)
    h_right = jnp.concatenate([h_t[:, 1:, :], pad], axis=1)
    h_lmr = jnp.concatenate([h_t, h_left, h_right], axis=2)
    z = jnp.concatenate([h_lmr, x, h_slot, h_intent], axis=2)

    def gate(name, nl):
        w, b = gate_weights[name], gate_biases[name]  # w: (H, 6H), b: (H,)
        return nl(jnp.einsum("blf,hf->blh", z, w) + b)

    i_t = gate("i", jax.nn.sigmoid)
    o_t = gate("o", jax.nn.sigmoid)
    f_t = gate("f", jax.nn.sigmoid)
    l_t = gate("l", jax.nn.sigmoid)
    r_t = gate("r", jax.nn.sigmoid)
    u_t = gate("u", jnp.tanh)

    stacked = jnp.stack([i_t, f_t, l_t, r_t], axis=0)
    sm = jax.nn.softmax(stacked, axis=0)
    i_s, f_s, l_s, r_s = sm[0], sm[1], sm[2], sm[3]

    c_left = jnp.concatenate([pad, c_t[:, :L - 1, :]], axis=1)
    c_right = jnp.concatenate([c_t[:, 1:, :], pad], axis=1)
    c_new = f_s * c_t + l_s * c_left + r_s * c_right + i_s * u_t
    h_new = o_t * jnp.tanh(c_new)
    return h_new, c_new


if __name__ == "__main__":
    # Small shapes: batch=2, seq=8, hidden=32 (x / h_slot / h_intent are also
    # hidden-sized, as implied by the 6*hidden Linear input).
    B, L, H = 2, 8, 32
    key = jax.random.PRNGKey(0)
    keys = jax.random.split(key, 20)

    h_t = jax.random.normal(keys[0], (B, L, H), dtype=jnp.float32)
    x = jax.random.normal(keys[1], (B, L, H), dtype=jnp.float32)
    h_slot = jax.random.normal(keys[2], (B, L, H), dtype=jnp.float32)
    h_intent = jax.random.normal(keys[3], (B, L, H), dtype=jnp.float32)
    c_t = jax.random.normal(keys[4], (B, L, H), dtype=jnp.float32)

    # Deterministic gate parameters: nn.Linear(6H, H) -> weight (H, 6H), bias (H,)
    gate_names = ["i", "o", "f", "l", "r", "u"]
    scale = 1.0 / jnp.sqrt(6.0 * H)
    gate_weights = {}
    gate_biases = {}
    for gi, name in enumerate(gate_names):
        gate_weights[name] = scale * jax.random.normal(
            keys[5 + gi], (H, 6 * H), dtype=jnp.float32)
        gate_biases[name] = scale * jax.random.normal(
            keys[11 + gi], (H,), dtype=jnp.float32)

    # Fuse into one (6H, 6H) matrix: columns blocked by gate [i,o,f,l,r,u],
    # rows blocked by input component [h_mid, h_left, h_right, x, slot, intent].
    w_all = jnp.concatenate([gate_weights[n].T for n in gate_names], axis=1)
    b_all = jnp.concatenate([gate_biases[n] for n in gate_names], axis=0)

    h_new, c_new = slstm_cell_forward(h_t, x, h_slot, h_intent, c_t,
                                      w_all, b_all)
    jax.block_until_ready((h_new, c_new))

    # Correctness check against a pure-JAX f32 reference.  Tolerance accounts
    # for the bf16 MXU operands (f32 accumulation) used in the kernel.
    h_ref, c_ref = _reference_forward(
        h_t, x, h_slot, h_intent, c_t, gate_weights, gate_biases)
    assert jnp.allclose(h_new, h_ref, atol=3e-2, rtol=3e-2)
    assert jnp.allclose(c_new, c_ref, atol=3e-2, rtol=3e-2)

    print("KERNEL_OK")
</pallas_src>

<mosaic_0001>
module attributes {stable_mosaic.version = 11 : i64} {
  func.func @_slstm_kernel(%arg0: i32, %arg1: i32, %arg2: memref<1x8x128xf32, #tpu.memory_space<vmem>>, %arg3: memref<1x8x128xf32, #tpu.memory_space<vmem>>, %arg4: memref<1x8x128xf32, #tpu.memory_space<vmem>>, %arg5: memref<1x8x128xf32, #tpu.memory_space<vmem>>, %arg6: memref<1x8x128xf32, #tpu.memory_space<vmem>>, %arg7: memref<1x1x1x128xf32, #tpu.memory_space<vmem>>, %arg8: memref<1x1x1x128xf32, #tpu.memory_space<vmem>>, %arg9: memref<1x1x1x128xf32, #tpu.memory_space<vmem>>, %arg10: memref<1x1x1x128xf32, #tpu.memory_space<vmem>>, %arg11: memref<768x768xbf16, #tpu.memory_space<vmem>>, %arg12: memref<1x768xf32, #tpu.memory_space<vmem>>, %arg13: memref<1x8x128xf32, #tpu.memory_space<vmem>>, %arg14: memref<1x8x128xf32, #tpu.memory_space<vmem>>) attributes {dimension_semantics = [#tpu.dimension_semantics<parallel>, #tpu.dimension_semantics<parallel>], iteration_bounds = array<i64: 2, 1>, scalar_prefetch = 0 : i64, scratch_operands = 0 : i64, tpu.core_type = #tpu.core_type<tc>, window_params = [{transform_indices = @transform_0, window_bounds = array<i64: 1, 8, 128>}, {transform_indices = @transform_1, window_bounds = array<i64: 1, 8, 128>}, {transform_indices = @transform_2, window_bounds = array<i64: 1, 8, 128>}, {transform_indices = @transform_3, window_bounds = array<i64: 1, 8, 128>}, {transform_indices = @transform_4, window_bounds = array<i64: 1, 8, 128>}, {transform_indices = @transform_5, window_bounds = array<i64: 1, 1, 1, 128>}, {transform_indices = @transform_6, window_bounds = array<i64: 1, 1, 1, 128>}, {transform_indices = @transform_7, window_bounds = array<i64: 1, 1, 1, 128>}, {transform_indices = @transform_8, window_bounds = array<i64: 1, 1, 1, 128>}, {pipeline_mode = #tpu.pipeline_mode<synchronous>, transform_indices = @transform_9, window_bounds = array<i64: 768, 768>}, {pipeline_mode = #tpu.pipeline_mode<synchronous>, transform_indices = @transform_10, window_bounds = array<i64: 1, 768>}, {transform_indices = @transform_11, window_bounds = array<i64: 1, 8, 128>}, {transform_indices = @transform_12, window_bounds = array<i64: 1, 8, 128>}]} {
    %c0 = arith.constant 0 : index
    %c0_0 = arith.constant 0 : index
    %c0_1 = arith.constant 0 : index
    %0 = vector.load %arg2[%c0, %c0_0, %c0_1] : memref<1x8x128xf32, #tpu.memory_space<vmem>>, vector<1x8x128xf32>
    %1 = vector.shape_cast %0 : vector<1x8x128xf32> to vector<8x128xf32>
    %c0_2 = arith.constant 0 : index
    %c0_3 = arith.constant 0 : index
    %c0_4 = arith.constant 0 : index
    %2 = vector.load %arg6[%c0_2, %c0_3, %c0_4] : memref<1x8x128xf32, #tpu.memory_space<vmem>>, vector<1x8x128xf32>
    %3 = vector.shape_cast %2 : vector<1x8x128xf32> to vector<8x128xf32>
    %c0_5 = arith.constant 0 : index
    %c0_6 = arith.constant 0 : index
    %c0_7 = arith.constant 0 : index
    %4 = vector.load %arg3[%c0_5, %c0_6, %c0_7] : memref<1x8x128xf32, #tpu.memory_space<vmem>>, vector<1x8x128xf32>
    %5 = vector.shape_cast %4 : vector<1x8x128xf32> to vector<8x128xf32>
    %c0_8 = arith.constant 0 : index
    %c0_9 = arith.constant 0 : index
    %c0_10 = arith.constant 0 : index
    %6 = vector.load %arg4[%c0_8, %c0_9, %c0_10] : memref<1x8x128xf32, #tpu.memory_space<vmem>>, vector<1x8x128xf32>
    %7 = vector.shape_cast %6 : vector<1x8x128xf32> to vector<8x128xf32>
    %c0_11 = arith.constant 0 : index
    %c0_12 = arith.constant 0 : index
    %c0_13 = arith.constant 0 : index
    %8 = vector.load %arg5[%c0_11, %c0_12, %c0_13] : memref<1x8x128xf32, #tpu.memory_space<vmem>>, vector<1x8x128xf32>
    %9 = vector.shape_cast %8 : vector<1x8x128xf32> to vector<8x128xf32>
    %c0_14 = arith.constant 0 : index
    %c0_15 = arith.constant 0 : index
    %c0_16 = arith.constant 0 : index
    %c0_17 = arith.constant 0 : index
    %10 = vector.load %arg7[%c0_14, %c0_15, %c0_16, %c0_17] : memref<1x1x1x128xf32, #tpu.memory_space<vmem>>, vector<1x1x1x128xf32>
    %11 = vector.shape_cast %10 : vector<1x1x1x128xf32> to vector<1x128xf32>
    %c0_18 = arith.constant 0 : index
    %c0_19 = arith.constant 0 : index
    %c0_20 = arith.constant 0 : index
    %c0_21 = arith.constant 0 : index
    %12 = vector.load %arg8[%c0_18, %c0_19, %c0_20, %c0_21] : memref<1x1x1x128xf32, #tpu.memory_space<vmem>>, vector<1x1x1x128xf32>
    %13 = vector.shape_cast %12 : vector<1x1x1x128xf32> to vector<1x128xf32>
    %c0_22 = arith.constant 0 : index
    %c0_23 = arith.constant 0 : index
    %c0_24 = arith.constant 0 : index
    %c0_25 = arith.constant 0 : index
    %14 = vector.load %arg9[%c0_22, %c0_23, %c0_24, %c0_25] : memref<1x1x1x128xf32, #tpu.memory_space<vmem>>, vector<1x1x1x128xf32>
    %15 = vector.shape_cast %14 : vector<1x1x1x128xf32> to vector<1x128xf32>
    %c0_26 = arith.constant 0 : index
    %c0_27 = arith.constant 0 : index
    %c0_28 = arith.constant 0 : index
    %c0_29 = arith.constant 0 : index
    %16 = vector.load %arg10[%c0_26, %c0_27, %c0_28, %c0_29] : memref<1x1x1x128xf32, #tpu.memory_space<vmem>>, vector<1x1x1x128xf32>
    %17 = vector.shape_cast %16 : vector<1x1x1x128xf32> to vector<1x128xf32>
    %18 = tpu.iota {dimensions = array<i32: 0>} : vector<8x1xi32>
    %c0_i32 = arith.constant 0 : i32
    %19 = vector.broadcast %c0_i32 : i32 to vector<8x1xi32>
    %20 = arith.cmpi eq, %18, %19 : vector<8x1xi32>
    %c7_i32 = arith.constant 7 : i32
    %21 = vector.broadcast %c7_i32 : i32 to vector<8x1xi32>
    %22 = arith.cmpi eq, %18, %21 : vector<8x1xi32>
    %c1_i32 = arith.constant 1 : i32
    %23 = tpu.dynamic_rotate %1 by %c1_i32 dim 0 : vector<8x128xf32>, i32 -> vector<8x128xf32>
    %24 = vector.shape_cast %20 : vector<8x1xi1> to vector<8x1xi1>
    %25 = vector.broadcast %24 : vector<8x1xi1> to vector<8x128xi1>
    %26 = vector.shape_cast %11 : vector<1x128xf32> to vector<1x128xf32>
    %27 = vector.broadcast %26 : vector<1x128xf32> to vector<8x128xf32>
    %28 = arith.select %25, %27, %23 : vector<8x128xi1>, vector<8x128xf32>
    %c7_i32_30 = arith.constant 7 : i32
    %29 = tpu.dynamic_rotate %1 by %c7_i32_30 dim 0 : vector<8x128xf32>, i32 -> vector<8x128xf32>
    %30 = vector.shape_cast %22 : vector<8x1xi1> to vector<8x1xi1>
    %31 = vector.broadcast %30 : vector<8x1xi1> to vector<8x128xi1>
    %32 = vector.shape_cast %13 : vector<1x128xf32> to vector<1x128xf32>
    %33 = vector.broadcast %32 : vector<1x128xf32> to vector<8x128xf32>
    %34 = arith.select %31, %33, %29 : vector<8x128xi1>, vector<8x128xf32>
    %c1_i32_31 = arith.constant 1 : i32
    %35 = tpu.dynamic_rotate %3 by %c1_i32_31 dim 0 : vector<8x128xf32>, i32 -> vector<8x128xf32>
    %36 = vector.shape_cast %20 : vector<8x1xi1> to vector<8x1xi1>
    %37 = vector.broadcast %36 : vector<8x1xi1> to vector<8x128xi1>
    %38 = vector.shape_cast %15 : vector<1x128xf32> to vector<1x128xf32>
    %39 = vector.broadcast %38 : vector<1x128xf32> to vector<8x128xf32>
    %40 = arith.select %37, %39, %35 : vector<8x128xi1>, vector<8x128xf32>
    %c7_i32_32 = arith.constant 7 : i32
    %41 = tpu.dynamic_rotate %3 by %c7_i32_32 dim 0 : vector<8x128xf32>, i32 -> vector<8x128xf32>
    %42 = vector.shape_cast %22 : vector<8x1xi1> to vector<8x1xi1>
    %43 = vector.broadcast %42 : vector<8x1xi1> to vector<8x128xi1>
    %44 = vector.shape_cast %17 : vector<1x128xf32> to vector<1x128xf32>
    %45 = vector.broadcast %44 : vector<1x128xf32> to vector<8x128xf32>
    %46 = arith.select %43, %45, %41 : vector<8x128xi1>, vector<8x128xf32>
    %47 = tpu.concatenate %1, %28, %34, %5, %7, %9 in 1 : vector<8x128xf32>, vector<8x128xf32>, vector<8x128xf32>, vector<8x128xf32>, vector<8x128xf32>, vector<8x128xf32> -> vector<8x768xf32>
    %48 = arith.truncf %47 : vector<8x768xf32> to vector<8x768xbf16>
    %c0_33 = arith.constant 0 : index
    %c0_34 = arith.constant 0 : index
    %49 = vector.load %arg11[%c0_33, %c0_34] : memref<768x768xbf16, #tpu.memory_space<vmem>>, vector<768x768xbf16>
    %cst = arith.constant dense<0.000000e+00> : vector<8x768xf32>
    %50 = tpu.matmul %48, %49, %cst {dimension_numbers = #tpu.dot_dimension_numbers<[1], [0], [0], [1], [0, 0, 1, 1], [], []>} : vector<8x768xbf16>, vector<768x768xbf16>, vector<8x768xf32> -> vector<8x768xf32>
    %c0_35 = arith.constant 0 : index
    %c0_36 = arith.constant 0 : index
    %51 = vector.load %arg12[%c0_35, %c0_36] : memref<1x768xf32, #tpu.memory_space<vmem>>, vector<1x768xf32>
    %52 = vector.broadcast %51 : vector<1x768xf32> to vector<8x768xf32>
    %53 = arith.addf %50, %52 : vector<8x768xf32>
    %54 = vector.extract_strided_slice %53 {offsets = [0, 0], sizes = [8, 128], strides = [1, 1]} : vector<8x768xf32> to vector<8x128xf32>
    %55 = arith.negf %54 : vector<8x128xf32>
    %56 = math.exp %55 : vector<8x128xf32>
    %cst_37 = arith.constant 1.000000e+00 : f32
    %57 = vector.broadcast %cst_37 : f32 to vector<8x128xf32>
    %58 = arith.addf %57, %56 : vector<8x128xf32>
    %59 = arith.divf %57, %58 : vector<8x128xf32>
    %60 = vector.extract_strided_slice %53 {offsets = [0, 128], sizes = [8, 128], strides = [1, 1]} : vector<8x768xf32> to vector<8x128xf32>
    %61 = arith.negf %60 : vector<8x128xf32>
    %62 = math.exp %61 : vector<8x128xf32>
    %cst_38 = arith.constant 1.000000e+00 : f32
    %63 = vector.broadcast %cst_38 : f32 to vector<8x128xf32>
    %64 = arith.addf %63, %62 : vector<8x128xf32>
    %65 = arith.divf %63, %64 : vector<8x128xf32>
    %66 = vector.extract_strided_slice %53 {offsets = [0, 256], sizes = [8, 128], strides = [1, 1]} : vector<8x768xf32> to vector<8x128xf32>
    %67 = arith.negf %66 : vector<8x128xf32>
    %68 = math.exp %67 : vector<8x128xf32>
    %cst_39 = arith.constant 1.000000e+00 : f32
    %69 = vector.broadcast %cst_39 : f32 to vector<8x128xf32>
    %70 = arith.addf %69, %68 : vector<8x128xf32>
    %71 = arith.divf %69, %70 : vector<8x128xf32>
    %72 = vector.extract_strided_slice %53 {offsets = [0, 384], sizes = [8, 128], strides = [1, 1]} : vector<8x768xf32> to vector<8x128xf32>
    %73 = arith.negf %72 : vector<8x128xf32>
    %74 = math.exp %73 : vector<8x128xf32>
    %cst_40 = arith.constant 1.000000e+00 : f32
    %75 = vector.broadcast %cst_40 : f32 to vector<8x128xf32>
    %76 = arith.addf %75, %74 : vector<8x128xf32>
    %77 = arith.divf %75, %76 : vector<8x128xf32>
    %78 = vector.extract_strided_slice %53 {offsets = [0, 512], sizes = [8, 128], strides = [1, 1]} : vector<8x768xf32> to vector<8x128xf32>
    %79 = arith.negf %78 : vector<8x128xf32>
    %80 = math.exp %79 : vector<8x128xf32>
    %cst_41 = arith.constant 1.000000e+00 : f32
    %81 = vector.broadcast %cst_41 : f32 to vector<8x128xf32>
    %82 = arith.addf %81, %80 : vector<8x128xf32>
    %83 = arith.divf %81, %82 : vector<8x128xf32>
    %84 = vector.extract_strided_slice %53 {offsets = [0, 640], sizes = [8, 128], strides = [1, 1]} : vector<8x768xf32> to vector<8x128xf32>
    %85 = math.tanh %84 : vector<8x128xf32>
    %86 = math.exp %59 : vector<8x128xf32>
    %87 = math.exp %71 : vector<8x128xf32>
    %88 = math.exp %77 : vector<8x128xf32>
    %89 = math.exp %83 : vector<8x128xf32>
    %90 = arith.addf %86, %87 : vector<8x128xf32>
    %91 = arith.addf %90, %88 : vector<8x128xf32>
    %92 = arith.addf %91, %89 : vector<8x128xf32>
    %cst_42 = arith.constant 1.000000e+00 : f32
    %93 = vector.broadcast %cst_42 : f32 to vector<8x128xf32>
    %94 = arith.divf %93, %92 : vector<8x128xf32>
    %95 = arith.mulf %87, %3 : vector<8x128xf32>
    %96 = arith.mulf %88, %40 : vector<8x128xf32>
    %97 = arith.addf %95, %96 : vector<8x128xf32>
    %98 = arith.mulf %89, %46 : vector<8x128xf32>
    %99 = arith.addf %97, %98 : vector<8x128xf32>
    %100 = arith.mulf %86, %85 : vector<8x128xf32>
    %101 = arith.addf %99, %100 : vector<8x128xf32>
    %102 = arith.mulf %101, %94 : vector<8x128xf32>
    %c0_43 = arith.constant 0 : index
    %c0_44 = arith.constant 0 : index
    %c0_45 = arith.constant 0 : index
    %103 = vector.load %arg14[%c0_43, %c0_44, %c0_45] : memref<1x8x128xf32, #tpu.memory_space<vmem>>, vector<1x8x128xf32>
    %104 = vector.shape_cast %103 : vector<1x8x128xf32> to vector<8x128xf32>
    %105 = vector.shape_cast %102 : vector<8x128xf32> to vector<1x8x128xf32>
    tpu.vector_store %arg14[%c0_43, %c0_44, %c0_45], %105 {strides = array<i32>} : memref<1x8x128xf32, #tpu.memory_space<vmem>>, vector<1x8x128xf32>,
    %106 = math.tanh %102 : vector<8x128xf32>
    %107 = arith.mulf %65, %106 : vector<8x128xf32>
    %c0_46 = arith.constant 0 : index
    %c0_47 = arith.constant 0 : index
    %c0_48 = arith.constant 0 : index
    %108 = vector.load %arg13[%c0_46, %c0_47, %c0_48] : memref<1x8x128xf32, #tpu.memory_space<vmem>>, vector<1x8x128xf32>
    %109 = vector.shape_cast %108 : vector<1x8x128xf32> to vector<8x128xf32>
    %110 = vector.shape_cast %107 : vector<8x128xf32> to vector<1x8x128xf32>
    tpu.vector_store %arg13[%c0_46, %c0_47, %c0_48], %110 {strides = array<i32>} : memref<1x8x128xf32, #tpu.memory_space<vmem>>, vector<1x8x128xf32>,
    return
  }
  func.func @transform_0(%arg0: i32, %arg1: i32) -> (i32, i32, i32) {
    %c0_i32 = arith.constant 0 : i32
    %c0_i32_0 = arith.constant 0 : i32
    return %arg0, %arg1, %c0_i32 : i32, i32, i32
  }
  func.func @transform_1(%arg0: i32, %arg1: i32) -> (i32, i32, i32) {
    %c0_i32 = arith.constant 0 : i32
    %c0_i32_0 = arith.constant 0 : i32
    return %arg0, %arg1, %c0_i32 : i32, i32, i32
  }
  func.func @transform_2(%arg0: i32, %arg1: i32) -> (i32, i32, i32) {
    %c0_i32 = arith.constant 0 : i32
    %c0_i32_0 = arith.constant 0 : i32
    return %arg0, %arg1, %c0_i32 : i32, i32, i32
  }
  func.func @transform_3(%arg0: i32, %arg1: i32) -> (i32, i32, i32) {
    %c0_i32 = arith.constant 0 : i32
    %c0_i32_0 = arith.constant 0 : i32
    return %arg0, %arg1, %c0_i32 : i32, i32, i32
  }
  func.func @transform_4(%arg0: i32, %arg1: i32) -> (i32, i32, i32) {
    %c0_i32 = arith.constant 0 : i32
    %c0_i32_0 = arith.constant 0 : i32
    return %arg0, %arg1, %c0_i32 : i32, i32, i32
  }
  func.func @transform_5(%arg0: i32, %arg1: i32) -> (i32, i32, i32, i32) {
    %c0_i32 = arith.constant 0 : i32
    %c0_i32_0 = arith.constant 0 : i32
    %c0_i32_1 = arith.constant 0 : i32
    return %arg0, %arg1, %c0_i32, %c0_i32_0 : i32, i32, i32, i32
  }
  func.func @transform_6(%arg0: i32, %arg1: i32) -> (i32, i32, i32, i32) {
    %c0_i32 = arith.constant 0 : i32
    %c0_i32_0 = arith.constant 0 : i32
    %c0_i32_1 = arith.constant 0 : i32
    return %arg0, %arg1, %c0_i32, %c0_i32_0 : i32, i32, i32, i32
  }
  func.func @transform_7(%arg0: i32, %arg1: i32) -> (i32, i32, i32, i32) {
    %c0_i32 = arith.constant 0 : i32
    %c0_i32_0 = arith.constant 0 : i32
    %c0_i32_1 = arith.constant 0 : i32
    return %arg0, %arg1, %c0_i32, %c0_i32_0 : i32, i32, i32, i32
  }
  func.func @transform_8(%arg0: i32, %arg1: i32) -> (i32, i32, i32, i32) {
    %c0_i32 = arith.constant 0 : i32
    %c0_i32_0 = arith.constant 0 : i32
    %c0_i32_1 = arith.constant 0 : i32
    return %arg0, %arg1, %c0_i32, %c0_i32_0 : i32, i32, i32, i32
  }
  func.func @transform_9(%arg0: i32, %arg1: i32) -> (i32, i32) {
    %c0_i32 = arith.constant 0 : i32
    %c0_i32_0 = arith.constant 0 : i32
    %c0_i32_1 = arith.constant 0 : i32
    return %c0_i32, %c0_i32_0 : i32, i32
  }
  func.func @transform_10(%arg0: i32, %arg1: i32) -> (i32, i32) {
    %c0_i32 = arith.constant 0 : i32
    %c0_i32_0 = arith.constant 0 : i32
    %c0_i32_1 = arith.constant 0 : i32
    return %c0_i32, %c0_i32_0 : i32, i32
  }
  func.func @transform_11(%arg0: i32, %arg1: i32) -> (i32, i32, i32) {
    %c0_i32 = arith.constant 0 : i32
    %c0_i32_0 = arith.constant 0 : i32
    return %arg0, %arg1, %c0_i32 : i32, i32, i32
  }
  func.func @transform_12(%arg0: i32, %arg1: i32) -> (i32, i32, i32) {
    %c0_i32 = arith.constant 0 : i32
    %c0_i32_0 = arith.constant 0 : i32
    return %arg0, %arg1, %c0_i32 : i32, i32, i32
  }
}

</mosaic_0001>

<bundles_post_ra>
// kernel: slstm_cell_forward.1
= control target key start
LH: loop header
LB: loop body
LE: loop exit
PB: predicated region body
PF: predicated region fallthrough
CT: control target
= control target key end

     0   :  { %s7051_s0 = inlined_call_operand.vmem [shape: f32[2,8,128], index: 0, kind: input, shape index: {}]   ;;  %s7052_s1 = inlined_call_operand.vmem [shape: f32[2,8,128], index: 1, kind: input, shape index: {}]   ;;  %s7053_s2 = inlined_call_operand.vmem [shape: f32[2,8,128], index: 2, kind: input, shape index: {}]   ;;  %s7054_s3 = inlined_call_operand.vmem [shape: f32[2,8,128], index: 3, kind: input, shape index: {}]   ;;  %s7055_s4 = inlined_call_operand.vmem [shape: f32[2,8,128], index: 4, kind: input, shape index: {}]   ;;  %s7056_s5 = inlined_call_operand.vmem [shape: f32[2,1,1,128], index: 5, kind: input, shape index: {}, may-alias: {5,6,7,8}]   ;;  %s7057_s6 = inlined_call_operand.vmem [shape: f32[2,1,1,128], index: 6, kind: input, shape index: {}, may-alias: {5,6,7,8}]   ;;  %s7058_s7 = inlined_call_operand.vmem [shape: f32[2,1,1,128], index: 7, kind: input, shape index: {}, may-alias: {5,6,7,8}]   ;;  %s7059_s8 = inlined_call_operand.vmem [shape: f32[2,1,1,128], index: 8, kind: input, shape index: {}, may-alias: {5,6,7,8}]   ;;  %s7060_s9 = inlined_call_operand.vmem [shape: bf16[768,768], index: 9, kind: input, shape index: {}]   ;;  %s7061_s10 = inlined_call_operand.vmem [shape: f32[1,768], index: 10, kind: input, shape index: {}]   ;;  %s7062_s11 = inlined_call_operand.hbm [shape: f32[2,8,128], index: 11, kind: output, shape index: {0}]   ;;  %s7063_s12 = inlined_call_operand.hbm [shape: f32[2,8,128], index: 12, kind: output, shape index: {1}]  }
   0x1   :  { %7068 = sst [smem:[#allocation12_spill]] %s7051_s0 }
   0x2   :  { %7069 = sst [smem:[#allocation13_spill]] %s7052_s1 }
   0x3   :  { %7070 = sst [smem:[#allocation14_spill]] %s7053_s2 }
   0x4   :  { %7071 = sst [smem:[#allocation15_spill]] %s7056_s5 }
   0x5   :  { %18 = vsyncpa [#allocation3], 0 }
   0x6   :  { %20 = vsyncpa [#allocation3 + $0x1], 0 }
   0x7   :  { %21 = vsyncpa [#allocation5], 0 }
   0x8   :  { %23 = vsyncpa [#allocation5 + $0x1], 0  ;;  %s5035_s21 = smov 0   ;;  %s5037_s22 = smov 0  }
   0x9   :  { %s5039_s23 = smov 0   ;;  %s5041_s24 = smov 0  }
   0xa   :  { %s5043_s25 = smov 0   ;;  %s5045_s26 = smov 0  }
   0xb LB: > { %7072 = sst [smem:[#allocation8_spill]] %s4956_s23  ;;  %s3296_s27 = sadd.s32 4294967295, %s4968_s26   ;;  %s4968_s26 = sphi %s5045_s26, %s29_s26   ;;  %s4964_s25 = sphi %s5043_s25, %s7088_s25   ;;  %s4960_s24 = sphi %s5041_s24, %s7087_s24   ;;  %s4956_s23 = sphi %s5039_s23, %s7086_s23   ;;  %s4952_s22 = sphi %s5037_s22, %s7090_s22   ;;  %s4948_s21 = sphi %s5035_s21, %s7089_s21  }
   0xc   : > { %7073 = sst [smem:[#allocation9_spill]] %s4964_s25  ;;  %s3297_s28 = sadd.s32 4294967294, %s4968_s26  }
   0xd   : > { %s41_s29 = sadd.s32 1, %s4964_s25  ;;  %s344_s30 = sadd.s32 1, %s4956_s23 }
   0xe   : > { %p43_p0 = scmp.ge.s32.totalorder %s41_s29, 2  ;;  %p354_p1 = scmp.ne.s32.totalorder %s4956_s23, %s4952_s22 }
   0xf   : > { %p355_p2 = scmp.eq.s32.totalorder %s3296_s27, 1  ;;  %p360_p3 = scmp.ne.s32.totalorder %s4952_s22, %s4948_s21 }
  0x10   : > { %s7092_s29 = smov (%p43_p0, %s41_s29), 0  ;;  %p361_p5 = scmp.eq.s32.totalorder %s3297_s28, 1 }
  0x11   : > { %7074 = sst [smem:[#allocation10_spill]] %s7092_s29  ;;  %p5075_p4 = por %p355_p2, %p354_p1 }
  0x12   : > { %s339_s14 = ssub.s32 %s4964_s25, %s7092_s29  ;;  %p3300_p6 = scmp.ge.s32.totalorder %s4968_s26, 1 }
  0x13   : > { %p342_p7 = scmp.eq.s32.totalorder %s339_s14, 0  ;;  %p5082_p8 = por %p361_p5, %p360_p3 }
  0x14   : > { %p499_p9 = scmp.lt.s32.totalorder %s4968_s26, 3 }
  0x15   : > { %s5088_s16 = scalar_select %p342_p7, %s4956_s23, %s344_s30  }
  0x16   : > { %p500_p10 = pnand %p3300_p6, %p499_p9 }
  0x17   : > { %7077 = sst [smem:[#allocation11_spill]] %s5088_s16  ;;  %p600_p11 = scmp.lt.s32.totalorder (!%p500_p10), %s4960_s24, 1 }
  0x18   : > { %503 = sbr.rel (%p500_p10) target bundleno = 494 (0x1ee), region = 64  ;;  %s7078_s5 = sld [smem:[#allocation15_spill]] (!%p500_p10) }
  0x19   : > { %s7079_s0 = sld [smem:[#allocation12_spill]] (!%p500_p10)  ;;  %s4467_s29 = sshll.u32 (!%p500_p10), %s4960_s24, 3 }
  0x1a   : > { %s7080_s1 = sld [smem:[#allocation13_spill]] (!%p500_p10) }
  0x1b   : > { %s7081_s2 = sld [smem:[#allocation14_spill]] (!%p500_p10) }
  0x1d   : > { %v3478_v0 = vld [vmem:[%s7060_s9 + $0x150] sm:$0xf]  ;;  %v4516_v1 = vld [vmem:[%s7060_s9 + $0x164] sm:$0xf0]  ;;  %v3454_v11 = vld [vmem:[%s7060_s9 + $0x120] sm:$0xf] }
  0x1e   : > { %v3670_v2 = vld [vmem:[%s7060_s9 + $0x2d0] sm:$0xf]  ;;  %v3479_v3 = vor.u32 %v4516_v1, %v3478_v0  ;;  %v4564_v4 = vld [vmem:[%s7060_s9 + $0x2e4] sm:$0xf0]  ;;  %v4510_v13 = vld [vmem:[%s7060_s9 + $0x134] sm:$0xf0] }
  0x1f   : > { %v3862_v5 = vld [vmem:[%s7060_s9 + $0x450] sm:$0xf]  ;;  %v4612_v6 = vld [vmem:[%s7060_s9 + $0x464] sm:$0xf0]  ;;  %v3671_v7 = vor.u32 %v4564_v4, %v3670_v2  ;;  %v3646_v14 = vld [vmem:[%s7060_s9 + $0x2a0] sm:$0xf]  ;;  %v3455_v16 = vor.u32 %v4510_v13, %v3454_v11 }
  0x20   : > { %v3863_v8 = vor.u32 %v4612_v6, %v3862_v5  ;;  %v4054_v9 = vld [vmem:[%s7060_s9 + $0x5d0] sm:$0xf]  ;;  %v4660_v10 = vld [vmem:[%s7060_s9 + $0x5e4] sm:$0xf0]  ;;  %2444 = vmatpush.bf16.msra.mxu0 %v3479_v3  ;;  %v4558_v15 = vld [vmem:[%s7060_s9 + $0x2b4] sm:$0xf0] }
  0x21   : > { %v4055_v12 = vor.u32 %v4660_v10, %v4054_v9  ;;  %2457 = vmatpush.bf16.msra.mxu1 %v3671_v7  ;;  %v3647_v17 = vor.u32 %v4558_v15, %v3646_v14  ;;  %v3838_v18 = vld [vmem:[%s7060_s9 + $0x420] sm:$0xf]  ;;  %v4606_v19 = vld [vmem:[%s7060_s9 + $0x434] sm:$0xf0]  ;;  %v3430_v23 = vld [vmem:[%s7060_s9 + $0xf0] sm:$0xf] }
  0x22   : > { %2470 = vmatpush.bf16.msra.mxu2 %v3863_v8  ;;  %v4030_v20 = vld [vmem:[%s7060_s9 + $0x5a0] sm:$0xf]  ;;  %v3839_v21 = vor.u32 %v4606_v19, %v3838_v18  ;;  %v4654_v22 = vld [vmem:[%s7060_s9 + $0x5b4] sm:$0xf0]  ;;  %v4504_v24 = vld [vmem:[%s7060_s9 + $0x104] sm:$0xf0] }
  0x23   : > { %2483 = vmatpush.bf16.msra.mxu3 %v4055_v12  ;;  %v4031_v25 = vor.u32 %v4654_v22, %v4030_v20  ;;  %v3622_v26 = vld [vmem:[%s7060_s9 + $0x270] sm:$0xf]  ;;  %v4552_v27 = vld [vmem:[%s7060_s9 + $0x284] sm:$0xf0]  ;;  %v3431_v29 = vor.u32 %v4504_v24, %v3430_v23  ;;  %v3406_v35 = vld [vmem:[%s7060_s9 + $0xc0] sm:$0xf] }
  0x24   : > { %v3814_v28 = vld [vmem:[%s7060_s9 + $0x3f0] sm:$0xf]  ;;  %2445 = vmatpush.bf16.msra.mxu0 %v3455_v16  ;;  %v4600_v30 = vld [vmem:[%s7060_s9 + $0x404] sm:$0xf0]  ;;  %v3623_v33 = vor.u32 %v4552_v27, %v3622_v26  ;;  %v4498_v36 = vld [vmem:[%s7060_s9 + $0xd4] sm:$0xf0] }
  0x25   : > { %v4006_v31 = vld [vmem:[%s7060_s9 + $0x570] sm:$0xf]  ;;  %v4648_v32 = vld [vmem:[%s7060_s9 + $0x584] sm:$0xf0]  ;;  %2458 = vmatpush.bf16.msra.mxu1 %v3647_v17  ;;  %v3815_v34 = vor.u32 %v4600_v30, %v3814_v28  ;;  %v3598_v37 = vld [vmem:[%s7060_s9 + $0x240] sm:$0xf]  ;;  %v3407_v44 = vor.u32 %v4498_v36, %v3406_v35 }
  0x26   : > { %2471 = vmatpush.bf16.msra.mxu2 %v3839_v21  ;;  %v4007_v38 = vor.u32 %v4648_v32, %v4006_v31  ;;  %v4546_v39 = vld [vmem:[%s7060_s9 + $0x254] sm:$0xf0]  ;;  %v3790_v40 = vld [vmem:[%s7060_s9 + $0x3c0] sm:$0xf]  ;;  %v3382_v47 = vld [vmem:[%s7060_s9 + $0x90] sm:$0xf] }
  0x27   : > { %2484 = vmatpush.bf16.msra.mxu3 %v4031_v25  ;;  %v4594_v41 = vld [vmem:[%s7060_s9 + $0x3d4] sm:$0xf0]  ;;  %v3982_v42 = vld [vmem:[%s7060_s9 + $0x540] sm:$0xf]  ;;  %v3599_v45 = vor.u32 %v4546_v39, %v3598_v37  ;;  %v4492_v48 = vld [vmem:[%s7060_s9 + $0xa4] sm:$0xf0] }
  0x28   : > { %v4642_v43 = vld [vmem:[%s7060_s9 + $0x554] sm:$0xf0]  ;;  %2446 = vmatpush.bf16.msra.mxu0 %v3431_v29  ;;  %v3791_v46 = vor.u32 %v4594_v41, %v3790_v40  ;;  %v3574_v49 = vld [vmem:[%s7060_s9 + $0x210] sm:$0xf]  ;;  %v4540_v51 = vld [vmem:[%s7060_s9 + $0x224] sm:$0xf0]  ;;  %v3383_v56 = vor.u32 %v4492_v48, %v3382_v47  ;;  %v668_v48 = vlaneseq }
  0x29   : > { %2459 = vmatpush.bf16.msra.mxu1 %v3623_v33  ;;  %v3983_v50 = vor.u32 %v4642_v43, %v3982_v42  ;;  %v3766_v52 = vld [vmem:[%s7060_s9 + $0x390] sm:$0xf]  ;;  %v4588_v53 = vld [vmem:[%s7060_s9 + $0x3a4] sm:$0xf0]  ;;  %v3575_v57 = vor.u32 %v4540_v51, %v3574_v49  ;;  %v3358_v59 = vld [vmem:[%s7060_s9 + $0x60] sm:$0xf] }
  0x2a   : > { %2472 = vmatpush.bf16.msra.mxu2 %v3815_v34  ;;  %v3958_v54 = vld [vmem:[%s7060_s9 + $0x510] sm:$0xf]  ;;  %v4636_v55 = vld [vmem:[%s7060_s9 + $0x524] sm:$0xf0]  ;;  %v3767_v58 = vor.u32 %v4588_v53, %v3766_v52  ;;  %v4486_v60 = vld [vmem:[%s7060_s9 + $0x74] sm:$0xf0] }
  0x2b   : > { %2485 = vmatpush.bf16.msra.mxu3 %v4007_v38  ;;  %v3550_v61 = vld [vmem:[%s7060_s9 + $0x1e0] sm:$0xf]  ;;  %v3959_v62 = vor.u32 %v4636_v55, %v3958_v54  ;;  %v4534_v63 = vld [vmem:[%s7060_s9 + $0x1f4] sm:$0xf0]  ;;  %v3359_v4 = vor.u32 %v4486_v60, %v3358_v59  ;;  %v3334_v7 = vld [vmem:[%s7060_s9 + $0x30] sm:$0xf] }
  0x2c   : > { %2447 = vmatpush.bf16.msra.mxu0 %v3407_v44  ;;  %v3742_v0 = vld [vmem:[%s7060_s9 + $0x360] sm:$0xf]  ;;  %v4582_v1 = vld [vmem:[%s7060_s9 + $0x374] sm:$0xf0]  ;;  %v3551_v5 = vor.u32 %v4534_v63, %v3550_v61  ;;  %v4480_v8 = vld [vmem:[%s7060_s9 + $0x44] sm:$0xf0] }
  0x2d   : > { %2460 = vmatpush.bf16.msra.mxu1 %v3599_v45  ;;  %v3934_v2 = vld [vmem:[%s7060_s9 + $0x4e0] sm:$0xf]  ;;  %v4630_v3 = vld [vmem:[%s7060_s9 + $0x4f4] sm:$0xf0]  ;;  %v3743_v6 = vor.u32 %v4582_v1, %v3742_v0  ;;  %v3526_v9 = vld [vmem:[%s7060_s9 + $0x1b0] sm:$0xf]  ;;  %v3335_v16 = vor.u32 %v4480_v8, %v3334_v7 }
  0x2e   : > { %2473 = vmatpush.bf16.msra.mxu2 %v3791_v46  ;;  %v3935_v10 = vor.u32 %v4630_v3, %v3934_v2  ;;  %v4528_v11 = vld [vmem:[%s7060_s9 + $0x1c4] sm:$0xf0]  ;;  %v3718_v12 = vld [vmem:[%s7060_s9 + $0x330] sm:$0xf]  ;;  %v3310_v17 = vld [vmem:[%s7060_s9] sm:$0xf] }
  0x2f   : > { %2486 = vmatpush.bf16.msra.mxu3 %v3983_v50  ;;  %v4576_v13 = vld [vmem:[%s7060_s9 + $0x344] sm:$0xf0]  ;;  %v3910_v14 = vld [vmem:[%s7060_s9 + $0x4b0] sm:$0xf]  ;;  %v4474_v18 = vld [vmem:[%s7060_s9 + $0x14] sm:$0xf0]  ;;  %v3527_v19 = vor.u32 %v4528_v11, %v3526_v9 }
  0x30   : > { %2448 = vmatpush.bf16.msra.mxu0 %v3383_v56  ;;  %v4624_v15 = vld [vmem:[%s7060_s9 + $0x4c4] sm:$0xf0]  ;;  %v3719_v20 = vor.u32 %v4576_v13, %v3718_v12  ;;  %v3502_v21 = vld [vmem:[%s7060_s9 + $0x180] sm:$0xf]  ;;  %v4522_v22 = vld [vmem:[%s7060_s9 + $0x194] sm:$0xf0]  ;;  %v3311_v31 = vor.u32 %v4474_v18, %v3310_v17 }
  0x31   : > { %2461 = vmatpush.bf16.msra.mxu1 %v3575_v57  ;;  %v3694_v23 = vld [vmem:[%s7060_s9 + $0x300] sm:$0xf]  ;;  %v3911_v24 = vor.u32 %v4624_v15, %v3910_v14  ;;  %v4570_v25 = vld [vmem:[%s7060_s9 + $0x314] sm:$0xf0]  ;;  %v4246_v26 = vld [vmem:[%s7060_s9 + $0x750] sm:$0xf]  ;;  %v3503_v35 = vor.u32 %v4522_v22, %v3502_v21 }
  0x32   : > { %2474 = vmatpush.bf16.msra.mxu2 %v3767_v58  ;;  %v4708_v27 = vld [vmem:[%s7060_s9 + $0x764] sm:$0xf0]  ;;  %v4438_v28 = vld [vmem:[%s7060_s9 + $0x8d0] sm:$0xf]  ;;  %v4513_v30 = vld [vmem:[%s7060_s9 + $0x154] sm:$0xf]  ;;  %v3695_v36 = vor.u32 %v4570_v25, %v3694_v23 }
  0x33   : > { %2487 = vmatpush.bf16.msra.mxu3 %v3959_v62  ;;  %v4756_v29 = vld [vmem:[%s7060_s9 + $0x8e4] sm:$0xf0]  ;;  %v3480_v32 = vld [vmem:[%s7060_s9 + $0x168] sm:$0xf0]  ;;  %v3886_v33 = vld [vmem:[%s7060_s9 + $0x480] sm:$0xf]  ;;  %v4247_v39 = vor.u32 %v4708_v27, %v4246_v26 }
  0x34   : > { %2449 = vmatpush.bf16.msra.mxu0 %v3359_v4  ;;  %v4618_v34 = vld [vmem:[%s7060_s9 + $0x494] sm:$0xf0]  ;;  %v4561_v37 = vld [vmem:[%s7060_s9 + $0x2d4] sm:$0xf]  ;;  %v3672_v38 = vld [vmem:[%s7060_s9 + $0x2e8] sm:$0xf0]  ;;  %v4439_v40 = vor.u32 %v4756_v29, %v4438_v28  ;;  %v3483_v43 = vor.u32 %v4513_v30, %v3480_v32 }
  0x35   : > { %2462 = vmatpush.bf16.msra.mxu1 %v3551_v5  ;;  %v4222_v41 = vld [vmem:[%s7060_s9 + $0x720] sm:$0xf]  ;;  %v4702_v42 = vld [vmem:[%s7060_s9 + $0x734] sm:$0xf0]  ;;  %v3887_v44 = vor.u32 %v4618_v34, %v3886_v33  ;;  %v4507_v47 = vld [vmem:[%s7060_s9 + $0x124] sm:$0xf]  ;;  %v3675_v49 = vor.u32 %v4561_v37, %v3672_v38 }
  0x36   : > { %2475 = vmatpush.bf16.msra.mxu2 %v3743_v6  ;;  %v4414_v45 = vld [vmem:[%s7060_s9 + $0x8a0] sm:$0xf]  ;;  %v4750_v46 = vld [vmem:[%s7060_s9 + $0x8b4] sm:$0xf0]  ;;  %v3456_v50 = vld [vmem:[%s7060_s9 + $0x138] sm:$0xf0]  ;;  %v4223_v56 = vor.u32 %v4702_v42, %v4222_v41 }
  0x37   : > { %2488 = vmatpush.bf16.msra.mxu3 %v3935_v10  ;;  %v4555_v51 = vld [vmem:[%s7060_s9 + $0x2a4] sm:$0xf]  ;;  %v3648_v52 = vld [vmem:[%s7060_s9 + $0x2b8] sm:$0xf0]  ;;  %v4198_v53 = vld [vmem:[%s7060_s9 + $0x6f0] sm:$0xf]  ;;  %v4415_v57 = vor.u32 %v4750_v46, %v4414_v45  ;;  %v3459_v61 = vor.u32 %v4507_v47, %v3456_v50 }
  0x38   : > { %2450 = vmatpush.bf16.msra.mxu0 %v3335_v16  ;;  %v4696_v54 = vld [vmem:[%s7060_s9 + $0x704] sm:$0xf0]  ;;  %v4390_v55 = vld [vmem:[%s7060_s9 + $0x870] sm:$0xf]  ;;  %v4501_v59 = vld [vmem:[%s7060_s9 + $0xf4] sm:$0xf]  ;;  %v3651_v1 = vor.u32 %v4555_v51, %v3648_v52 }
  0x39   : > { %2463 = vmatpush.bf16.msra.mxu1 %v3527_v19  ;;  %v4744_v58 = vld [vmem:[%s7060_s9 + $0x884] sm:$0xf0]  ;;  %v3432_v60 = vld [vmem:[%s7060_s9 + $0x108] sm:$0xf0]  ;;  %v4549_v62 = vld [vmem:[%s7060_s9 + $0x274] sm:$0xf]  ;;  %v4199_v7 = vor.u32 %v4696_v54, %v4198_v53 }
  0x3a   : > { %2476 = vmatpush.bf16.msra.mxu2 %v3719_v20  ;;  %v3624_v63 = vld [vmem:[%s7060_s9 + $0x288] sm:$0xf0]  ;;  %s5356_s23 = scalar_select %p600_p11, %s4960_s24, 1  ;;  %v5358_v0 = vshrl.u32 %v668_v48, 7  ;;  %v4174_v2 = vld [vmem:[%s7060_s9 + $0x6c0] sm:$0xf]  ;;  %v4391_v8 = vor.u32 %v4744_v58, %v4390_v55  ;;  %v3435_v11 = vor.u32 %v4501_v59, %v3432_v60 }
  0x3b   : > { %2489 = vmatpush.bf16.msra.mxu3 %v3911_v24  ;;  %v4690_v3 = vld [vmem:[%s7060_s9 + $0x6d4] sm:$0xf0]  ;;  %v4366_v4 = vld [vmem:[%s7060_s9 + $0x840] sm:$0xf]  ;;  %v4495_v6 = vld [vmem:[%s7060_s9 + $0xc4] sm:$0xf]  ;;  %v3627_v13 = vor.u32 %v4549_v62, %v3624_v63 }
  0x3c   : > { %2451 = vmatpush.bf16.msra.mxu0 %v3311_v31  ;;  %v4738_v5 = vld [vmem:[%s7060_s9 + $0x854] sm:$0xf0]  ;;  %s5376_s28 = sshll.u32 %s5356_s23, 3  ;;  %s640_s16 = scalar_lea.vmem %s7078_s5, %s5356_s23  ;;  %v3408_v9 = vld [vmem:[%s7060_s9 + $0xd8] sm:$0xf0]  ;;  %vm670_vm0 = vcmp.eq.s32.totalorder %v5358_v0, 0  ;;  %v4175_v18 = vor.u32 %v4690_v3, %v4174_v2 }
  0x3d   : > { %2464 = vmatpush.bf16.msra.mxu1 %v3503_v35  ;;  %s606_s20 = scalar_lea.vmem %s7079_s0, %s5376_s28  ;;  %v4819_v10 = vld [vmem:[%s640_s16] ss:$0 sm:$0xff]  ;;  %s646_s25 = scalar_lea.vmem %s7057_s6, %s5356_s23  ;;  %vm671_vm1 = vcmp.eq.s32.totalorder %v5358_v0, 7  ;;  %v4367_v19 = vor.u32 %v4738_v5, %v4366_v4  ;;  %v4543_v20 = vld [vmem:[%s7060_s9 + $0x244] sm:$0xf]  ;;  %v3411_v23 = vor.u32 %v4495_v6, %v3408_v9 }
  0x3e   : > { %2477 = vmatpush.bf16.msra.mxu2 %v3695_v36  ;;  %v659_v12 = vld [vmem:[%s606_s20] sm:$0xff]  ;;  %s613_s30 = scalar_lea.vmem %s7080_s1, %s5376_s28  ;;  %v3600_v21 = vld [vmem:[%s7060_s9 + $0x258] sm:$0xf0]  ;;  %v4150_v24 = vld [vmem:[%s7060_s9 + $0x690] sm:$0xf]  ;;  %s620_s16 = scalar_lea.vmem %s7081_s2, %s5376_s28 }
  0x3f   : > { %2490 = vmatpush.bf16.msra.mxu3 %v3887_v44  ;;  %v672_v14 = vrot.slane %v659_v12, 7  ;;  %v679_v15 = vrot.slane %v659_v12, 1  ;;  %v5399_v16 = vpack.c.bf16 %v659_v12, %v659_v12  ;;  %v4820_v17 = vld [vmem:[%s646_s25] ss:$0 sm:$0xff]  ;;  %v4684_v27 = vld [vmem:[%s7060_s9 + $0x6a4] sm:$0xf0]  ;;  %v3603_v33 = vor.u32 %v4543_v20, %v3600_v21  ;;  %s627_s0 = scalar_lea.vmem %s7054_s3, %s5376_s28  ;;  %s652_s1 = scalar_lea.vmem %s7058_s7, %s5356_s23 }
  0x40   : > { %2496 = vmatpush.bf16.msrb.mxu0 %v4247_v39  ;;  %v661_v22 = vld [vmem:[%s613_s30] sm:$0xff]  ;;  %v4342_v28 = vld [vmem:[%s7060_s9 + $0x810] sm:$0xf]  ;;  %v4732_v29 = vld [vmem:[%s7060_s9 + $0x824] sm:$0xf0]  ;;  %v4151_v38 = vor.u32 %v4684_v27, %v4150_v24  ;;  %s658_s17 = scalar_lea.vmem %s7059_s8, %s5356_s23  ;;  %s634_s20 = scalar_lea.vmem %s7055_s4, %s5376_s28 }
  0x41   : > { %2509 = vmatpush.bf16.msrb.mxu1 %v4439_v40  ;;  %v678_v25 = vsel %vm670_vm0, %v4819_v10, %v672_v14  ;;  %v685_v26 = vsel %vm671_vm1, %v4820_v17, %v679_v15  ;;  %2452 = vmatmul.bf16.vlgmr.msra.gmra.mxu0 %v5399_v16  ;;  %v5428_v32 = vpack.c.bf16 %v661_v22, %v661_v22  ;;  %v4489_v34 = vld [vmem:[%s7060_s9 + $0x94] sm:$0xf]  ;;  %v3384_v35 = vld [vmem:[%s7060_s9 + $0xa8] sm:$0xf0]  ;;  %v4126_v40 = vld [vmem:[%s7060_s9 + $0x660] sm:$0xf] }
  0x42   : > { %2522 = vmatpush.bf16.msrb.mxu2 %v3483_v43  ;;  %v5424_v30 = vpack.c.bf16 %v678_v25, %v678_v25  ;;  %v5426_v31 = vpack.c.bf16 %v685_v26, %v685_v26  ;;  %v4537_v36 = vld [vmem:[%s7060_s9 + $0x214] sm:$0xf]  ;;  %v3576_v37 = vld [vmem:[%s7060_s9 + $0x228] sm:$0xf0]  ;;  %v4343_v39 = vor.u32 %v4732_v29, %v4342_v28  ;;  %v3387_v41 = vor.u32 %v4489_v34, %v3384_v35  ;;  %v4678_v42 = vld [vmem:[%s7060_s9 + $0x674] sm:$0xf0] }
  0x43   : > { %2535 = vmatpush.bf16.msrb.mxu3 %v3675_v49  ;;  %v4318_v43 = vld [vmem:[%s7060_s9 + $0x7e0] sm:$0xf]  ;;  %v4726_v44 = vld [vmem:[%s7060_s9 + $0x7f4] sm:$0xf0]  ;;  %v3579_v45 = vor.u32 %v4537_v36, %v3576_v37  ;;  %v4483_v46 = vld [vmem:[%s7060_s9 + $0x64] sm:$0xf]  ;;  %v4127_v50 = vor.u32 %v4678_v42, %v4126_v40 }
  0x44   : > { %2497 = vmatpush.bf16.msrb.mxu0 %v4223_v56  ;;  %2465 = vmatmul.bf16.vlgmr.msra.gmra.mxu1 %v5424_v30  ;;  %v3360_v47 = vld [vmem:[%s7060_s9 + $0x78] sm:$0xf0]  ;;  %v4531_v48 = vld [vmem:[%s7060_s9 + $0x1e4] sm:$0xf]  ;;  %v4319_v51 = vor.u32 %v4726_v44, %v4318_v43  ;;  %v4102_v52 = vld [vmem:[%s7060_s9 + $0x630] sm:$0xf] }
  0x45   : > { %2510 = vmatpush.bf16.msrb.mxu1 %v4415_v57  ;;  %2478 = vmatmul.bf16.vlgmr.msra.gmra.mxu2 %v5426_v31  ;;  %v3552_v49 = vld [vmem:[%s7060_s9 + $0x1f8] sm:$0xf0]  ;;  %v3363_v53 = vor.u32 %v4483_v46, %v3360_v47  ;;  %v4672_v54 = vld [vmem:[%s7060_s9 + $0x644] sm:$0xf0]  ;;  %v4294_v55 = vld [vmem:[%s7060_s9 + $0x7b0] sm:$0xf] }
  0x46   : > { %2523 = vmatpush.bf16.msrb.mxu2 %v3459_v61  ;;  %2491 = vmatmul.bf16.vlgmr.msra.gmra.mxu3 %v5428_v32  ;;  %v4720_v56 = vld [vmem:[%s7060_s9 + $0x7c4] sm:$0xf0]  ;;  %v3555_v57 = vor.u32 %v4531_v48, %v3552_v49  ;;  %v4477_v58 = vld [vmem:[%s7060_s9 + $0x34] sm:$0xf]  ;;  %v3336_v59 = vld [vmem:[%s7060_s9 + $0x48] sm:$0xf0]  ;;  %v4103_v62 = vor.u32 %v4672_v54, %v4102_v52 }
  0x47   : > { %2536 = vmatpush.bf16.msrb.mxu3 %v3651_v1  ;;  %v4525_v60 = vld [vmem:[%s7060_s9 + $0x1b4] sm:$0xf]  ;;  %v3528_v61 = vld [vmem:[%s7060_s9 + $0x1c8] sm:$0xf0]  ;;  %v4295_v63 = vor.u32 %v4720_v56, %v4294_v55  ;;  %v4078_v1 = vld [vmem:[%s7060_s9 + $0x600] sm:$0xf]  ;;  %v3339_v4 = vor.u32 %v4477_v58, %v3336_v59 }
  0x48   : > { %2498 = vmatpush.bf16.msrb.mxu0 %v4199_v7  ;;  %v4666_v2 = vld [vmem:[%s7060_s9 + $0x614] sm:$0xf0]  ;;  %v4270_v3 = vld [vmem:[%s7060_s9 + $0x780] sm:$0xf]  ;;  %v4471_v6 = vld [vmem:[%s7060_s9 + $0x4] sm:$0xf] }
  0x49   : > { %2511 = vmatpush.bf16.msrb.mxu1 %v4391_v8  ;;  %v4714_v5 = vld [vmem:[%s7060_s9 + $0x794] sm:$0xf0]  ;;  %v3312_v7 = vld [vmem:[%s7060_s9 + $0x18] sm:$0xf0]  ;;  %v3531_v8 = vor.u32 %v4525_v60, %v3528_v61  ;;  %v4609_v9 = vld [vmem:[%s7060_s9 + $0x454] sm:$0xf]  ;;  %v4079_v15 = vor.u32 %v4666_v2, %v4078_v1 }
  0x4a   : > { %2524 = vmatpush.bf16.msrb.mxu2 %v3435_v11  ;;  %v3864_v10 = vld [vmem:[%s7060_s9 + $0x468] sm:$0xf0]  ;;  %v4657_v11 = vld [vmem:[%s7060_s9 + $0x5d4] sm:$0xf]  ;;  %v4271_v17 = vor.u32 %v4714_v5, %v4270_v3  ;;  %v662_v20 = vld [vmem:[%s620_s16] sm:$0xff]  ;;  %v3315_v21 = vor.u32 %v4471_v6, %v3312_v7  ;;  %s6976_s23 = sand.u32 1, %s4952_s22   ;;  %s3078_s16 = scalar_lea.hbm %s7063_s12, %s4467_s29 }
  0x4b   : > { %2537 = vmatpush.bf16.msrb.mxu3 %v3627_v13  ;;  %v4056_v12 = vld [vmem:[%s7060_s9 + $0x5e8] sm:$0xf0]  ;;  %v4705_v13 = vld [vmem:[%s7060_s9 + $0x754] sm:$0xf]  ;;  %v3867_v22 = vor.u32 %v4609_v9, %v3864_v10  ;;  %v663_v25 = vld [vmem:[%s627_s0] sm:$0xff]  ;;  %v5558_v35 = vpack.c.bf16 %v662_v20, %v662_v20  ;;  %s7067_s25 = sshll.u32 %s6976_s23, 3 }
  0x4c   : > { %2499 = vmatpush.bf16.msrb.mxu0 %v4175_v18  ;;  %v4248_v14 = vld [vmem:[%s7060_s9 + $0x768] sm:$0xf0]  ;;  %v4519_v18 = vld [vmem:[%s7060_s9 + $0x184] sm:$0xf]  ;;  %v4059_v26 = vor.u32 %v4657_v11, %v4056_v12  ;;  %v3840_v29 = vld [vmem:[%s7060_s9 + $0x438] sm:$0xf0]  ;;  %v5569_v40 = vpack.c.bf16 %v663_v25, %v663_v25 }
  0x4d   : > { %2512 = vmatpush.bf16.msrb.mxu1 %v4367_v19  ;;  %v3504_v19 = vld [vmem:[%s7060_s9 + $0x198] sm:$0xf0]  ;;  %v4440_v24 = vld [vmem:[%s7060_s9 + $0x8e8] sm:$0xf0]  ;;  %v4251_v27 = vor.u32 %v4705_v13, %v4248_v14  ;;  %v4603_v28 = vld [vmem:[%s7060_s9 + $0x424] sm:$0xf] }
  0x4e   : > { %2525 = vmatpush.bf16.msrb.mxu2 %v3411_v23  ;;  %v4753_v23 = vld [vmem:[%s7060_s9 + $0x8d4] sm:$0xf]  ;;  %v3507_v34 = vor.u32 %v4519_v18, %v3504_v19  ;;  %v4032_v36 = vld [vmem:[%s7060_s9 + $0x5b8] sm:$0xf0]  ;;  %v4699_v37 = vld [vmem:[%s7060_s9 + $0x724] sm:$0xf] }
  0x4f   : > { %2538 = vmatpush.bf16.msrb.mxu3 %v3603_v33  ;;  %v4651_v33 = vld [vmem:[%s7060_s9 + $0x5a4] sm:$0xf]  ;;  %v4416_v43 = vld [vmem:[%s7060_s9 + $0x8b8] sm:$0xf0]  ;;  %v4597_v46 = vld [vmem:[%s7060_s9 + $0x3f4] sm:$0xf] }
  0x50   : > { %2500 = vmatpush.bf16.msrb.mxu0 %v4151_v38  ;;  %v4224_v38 = vld [vmem:[%s7060_s9 + $0x738] sm:$0xf0]  ;;  %v4747_v42 = vld [vmem:[%s7060_s9 + $0x8a4] sm:$0xf]  ;;  %v4035_v44 = vor.u32 %v4651_v33, %v4032_v36  ;;  %v3816_v47 = vld [vmem:[%s7060_s9 + $0x408] sm:$0xf0] }
  0x51   : > { %2513 = vmatpush.bf16.msrb.mxu1 %v4343_v39  ;;  %v4443_v39 = vor.u32 %v4753_v23, %v4440_v24  ;;  %v4645_v48 = vld [vmem:[%s7060_s9 + $0x574] sm:$0xf]  ;;  %v4008_v49 = vld [vmem:[%s7060_s9 + $0x588] sm:$0xf0]  ;;  %v4419_v52 = vor.u32 %v4747_v42, %v4416_v43  ;;  %v4591_v58 = vld [vmem:[%s7060_s9 + $0x3c4] sm:$0xf] }
  0x52   : > { %2526 = vmatpush.bf16.msrb.mxu2 %v3387_v41  ;;  %v3843_v41 = vor.u32 %v4603_v28, %v3840_v29  ;;  %v4741_v54 = vld [vmem:[%s7060_s9 + $0x874] sm:$0xf]  ;;  %v4392_v55 = vld [vmem:[%s7060_s9 + $0x888] sm:$0xf0]  ;;  %v4011_v56 = vor.u32 %v4645_v48, %v4008_v49  ;;  %v3792_v59 = vld [vmem:[%s7060_s9 + $0x3d8] sm:$0xf0] }
  0x53   : > { %2539 = vmatpush.bf16.msrb.mxu3 %v3579_v45  ;;  %v4227_v45 = vor.u32 %v4699_v37, %v4224_v38  ;;  %v4639_v60 = vld [vmem:[%s7060_s9 + $0x544] sm:$0xf]  ;;  %v3984_v61 = vld [vmem:[%s7060_s9 + $0x558] sm:$0xf0]  ;;  %v4395_v1 = vor.u32 %v4741_v54, %v4392_v55  ;;  %v3795_v2 = vor.u32 %v4591_v58, %v3792_v59  ;;  %v4585_v7 = vld [vmem:[%s7060_s9 + $0x394] sm:$0xf] }
  0x54   : > { %2501 = vmatpush.bf16.msrb.mxu0 %v4127_v50  ;;  %v4693_v50 = vld [vmem:[%s7060_s9 + $0x6f4] sm:$0xf]  ;;  %v4735_v3 = vld [vmem:[%s7060_s9 + $0x844] sm:$0xf]  ;;  %v3987_v5 = vor.u32 %v4639_v60, %v3984_v61  ;;  %v3960_v10 = vld [vmem:[%s7060_s9 + $0x528] sm:$0xf0] }
  0x55   : > { %2514 = vmatpush.bf16.msrb.mxu1 %v4319_v51  ;;  %v4200_v51 = vld [vmem:[%s7060_s9 + $0x708] sm:$0xf0]  ;;  %v4633_v9 = vld [vmem:[%s7060_s9 + $0x514] sm:$0xf]  ;;  %v4579_v20 = vld [vmem:[%s7060_s9 + $0x364] sm:$0xf] }
  0x56   : > { %2527 = vmatpush.bf16.msrb.mxu2 %v3363_v53  ;;  %v3819_v53 = vor.u32 %v4597_v46, %v3816_v47  ;;  %v4681_v11 = vld [vmem:[%s7060_s9 + $0x694] sm:$0xf]  ;;  %v4152_v12 = vld [vmem:[%s7060_s9 + $0x6a8] sm:$0xf0]  ;;  %v3963_v18 = vor.u32 %v4633_v9, %v3960_v10  ;;  %v3936_v23 = vld [vmem:[%s7060_s9 + $0x4f8] sm:$0xf0] }
  0x57   : > { %2540 = vmatpush.bf16.msrb.mxu3 %v3555_v57  ;;  %v4203_v57 = vor.u32 %v4693_v50, %v4200_v51  ;;  %v4155_v19 = vor.u32 %v4681_v11, %v4152_v12  ;;  %v4675_v24 = vld [vmem:[%s7060_s9 + $0x664] sm:$0xf]  ;;  %v4128_v25 = vld [vmem:[%s7060_s9 + $0x678] sm:$0xf0]  ;;  %v4573_v36 = vld [vmem:[%s7060_s9 + $0x334] sm:$0xf] }
  0x58   : > { %2502 = vmatpush.bf16.msrb.mxu0 %v4103_v62  ;;  %v4687_v62 = vld [vmem:[%s7060_s9 + $0x6c4] sm:$0xf]  ;;  %v4320_v29 = vld [vmem:[%s7060_s9 + $0x7f8] sm:$0xf0]  ;;  %v3720_v37 = vld [vmem:[%s7060_s9 + $0x348] sm:$0xf0] }
  0x59   : > { %2515 = vmatpush.bf16.msrb.mxu1 %v4295_v63  ;;  %v4176_v63 = vld [vmem:[%s7060_s9 + $0x6d8] sm:$0xf0]  ;;  %v4723_v28 = vld [vmem:[%s7060_s9 + $0x7e4] sm:$0xf]  ;;  %v4621_v38 = vld [vmem:[%s7060_s9 + $0x4b4] sm:$0xf] }
  0x5a   : > { %2528 = vmatpush.bf16.msrb.mxu2 %v3339_v4  ;;  %v4368_v4 = vld [vmem:[%s7060_s9 + $0x858] sm:$0xf0]  ;;  %v4179_v6 = vor.u32 %v4687_v62, %v4176_v63  ;;  %v4104_v42 = vld [vmem:[%s7060_s9 + $0x648] sm:$0xf0]  ;;  %v4323_v43 = vor.u32 %v4723_v28, %v4320_v29  ;;  %v4567_v47 = vld [vmem:[%s7060_s9 + $0x304] sm:$0xf] }
  0x5b   : > { %2541 = vmatpush.bf16.msrb.mxu3 %v3531_v8  ;;  %v3768_v8 = vld [vmem:[%s7060_s9 + $0x3a8] sm:$0xf0]  ;;  %v4371_v13 = vor.u32 %v4735_v3, %v4368_v4  ;;  %v3696_v48 = vld [vmem:[%s7060_s9 + $0x318] sm:$0xf0]  ;;  %v4615_v51 = vld [vmem:[%s7060_s9 + $0x484] sm:$0xf] }
  0x5c   : > { %2503 = vmatpush.bf16.msrb.mxu0 %v4079_v15  ;;  %v3771_v14 = vor.u32 %v4585_v7, %v3768_v8  ;;  %v4729_v15 = vld [vmem:[%s7060_s9 + $0x814] sm:$0xf]  ;;  %v4296_v46 = vld [vmem:[%s7060_s9 + $0x7c8] sm:$0xf0]  ;;  %v4080_v54 = vld [vmem:[%s7060_s9 + $0x618] sm:$0xf0]  ;;  %v3699_v61 = vor.u32 %v4567_v47, %v3696_v48 }
  0x5d   : > { %2516 = vmatpush.bf16.msrb.mxu1 %v4271_v17  ;;  %v4344_v17 = vld [vmem:[%s7060_s9 + $0x828] sm:$0xf0]  ;;  %v3486_v55 = vld [vmem:[%s7060_s9 + $0x158] sm:$0xf]  ;;  %v4565_v59 = vld [vmem:[%s7060_s9 + $0x2ec] sm:$0xf0] }
  0x5e   : > { %2529 = vmatpush.bf16.msrb.mxu2 %v3315_v21  ;;  %v3744_v21 = vld [vmem:[%s7060_s9 + $0x378] sm:$0xf0]  ;;  %v3678_v58 = vld [vmem:[%s7060_s9 + $0x2d8] sm:$0xf]  ;;  %v4613_v62 = vld [vmem:[%s7060_s9 + $0x46c] sm:$0xf0] }
  0x5f   : > { %2542 = vmatpush.bf16.msrb.mxu3 %v3507_v34  ;;  %2504 = vmatmul.bf16.vlgmr.msrb.gmra.mxu0 %v5558_v35  ;;  %v4131_v34 = vor.u32 %v4675_v24, %v4128_v25  ;;  %v3870_v60 = vld [vmem:[%s7060_s9 + $0x458] sm:$0xf]  ;;  %v4711_v63 = vld [vmem:[%s7060_s9 + $0x784] sm:$0xf]  ;;  %v3679_v7 = vor.u32 %v4565_v59, %v3678_v58  ;;  %v3462_v8 = vld [vmem:[%s7060_s9 + $0x128] sm:$0xf] }
  0x60   : > { %2548 = vmatpush.bf16.msra.mxu0 %v3867_v22  ;;  %2517 = vmatmul.bf16.vlgmr.msrb.gmra.mxu1 %v5569_v40  ;;  %v4627_v22 = vld [vmem:[%s7060_s9 + $0x4e4] sm:$0xf]  ;;  %v4062_v4 = vld [vmem:[%s7060_s9 + $0x5d8] sm:$0xf]  ;;  %v3871_v9 = vor.u32 %v4613_v62, %v3870_v60  ;;  %v4511_v11 = vld [vmem:[%s7060_s9 + $0x13c] sm:$0xf0] }
  0x61   : > { %2561 = vmatpush.bf16.msra.mxu1 %v4059_v26  ;;  %2530 = vmatmul.bf16.vlgmr.msrb.gmra.mxu2 %v5399_v16  ;;  %v4347_v26 = vor.u32 %v4729_v15, %v4344_v17  ;;  %v3939_v33 = vor.u32 %v4627_v22, %v3936_v23  ;;  %v3654_v12 = vld [vmem:[%s7060_s9 + $0x2a8] sm:$0xf]  ;;  %v4607_v17 = vld [vmem:[%s7060_s9 + $0x43c] sm:$0xf0]  ;;  %v3438_v22 = vld [vmem:[%s7060_s9 + $0xf8] sm:$0xf] }
  0x62   : > { %2574 = vmatpush.bf16.msra.mxu2 %v4251_v27  ;;  %2543 = vmatmul.bf16.vlgmr.msrb.gmra.mxu3 %v5424_v30  ;;  %v3747_v27 = vor.u32 %v4579_v20, %v3744_v21  ;;  %v3846_v15 = vld [vmem:[%s7060_s9 + $0x428] sm:$0xf]  ;;  %v3463_v20 = vor.u32 %v4511_v11, %v3462_v8  ;;  %v4505_v24 = vld [vmem:[%s7060_s9 + $0x10c] sm:$0xf0]  ;;  %v3630_v25 = vld [vmem:[%s7060_s9 + $0x278] sm:$0xf] }
  0x63   : > { %2587 = vmatpush.bf16.msra.mxu3 %v4443_v39  ;;  %v3912_v39 = vld [vmem:[%s7060_s9 + $0x4c8] sm:$0xf0]  ;;  %v3847_v23 = vor.u32 %v4607_v17, %v3846_v15  ;;  %v3822_v28 = vld [vmem:[%s7060_s9 + $0x3f8] sm:$0xf]  ;;  %v4601_v29 = vld [vmem:[%s7060_s9 + $0x40c] sm:$0xf0] }
  0x64   : > { %2549 = vmatpush.bf16.msra.mxu0 %v3843_v41  ;;  %v4669_v41 = vld [vmem:[%s7060_s9 + $0x634] sm:$0xf]  ;;  %v3915_v49 = vor.u32 %v4621_v38, %v3912_v39  ;;  %v3414_v38 = vld [vmem:[%s7060_s9 + $0xc8] sm:$0xf]  ;;  %v3823_v39 = vor.u32 %v4601_v29, %v3822_v28  ;;  %v4643_v48 = vld [vmem:[%s7060_s9 + $0x55c] sm:$0xf0] }
  0x65   : > { %2562 = vmatpush.bf16.msra.mxu1 %v4035_v44  ;;  %v4717_v44 = vld [vmem:[%s7060_s9 + $0x7b4] sm:$0xf]  ;;  %v4107_v50 = vor.u32 %v4669_v41, %v4104_v42  ;;  %v4499_v41 = vld [vmem:[%s7060_s9 + $0xdc] sm:$0xf0]  ;;  %v3606_v42 = vld [vmem:[%s7060_s9 + $0x248] sm:$0xf] }
  0x66   : > { %2575 = vmatpush.bf16.msra.mxu2 %v4227_v45  ;;  %v3723_v45 = vor.u32 %v4573_v36, %v3720_v37  ;;  %v3439_v36 = vor.u32 %v4505_v24, %v3438_v22  ;;  %v3990_v47 = vld [vmem:[%s7060_s9 + $0x548] sm:$0xf]  ;;  %v4589_v58 = vld [vmem:[%s7060_s9 + $0x3ac] sm:$0xf0]  ;;  %v3966_v59 = vld [vmem:[%s7060_s9 + $0x518] sm:$0xf] }
  0x67   : > { %2588 = vmatpush.bf16.msra.mxu3 %v4419_v52  ;;  %v3888_v52 = vld [vmem:[%s7060_s9 + $0x498] sm:$0xf0]  ;;  %v4637_v60 = vld [vmem:[%s7060_s9 + $0x52c] sm:$0xf0]  ;;  %v3942_v8 = vld [vmem:[%s7060_s9 + $0x4e8] sm:$0xf] }
  0x68   : > { %2550 = vmatpush.bf16.msra.mxu0 %v3819_v53  ;;  %v4663_v53 = vld [vmem:[%s7060_s9 + $0x604] sm:$0xf]  ;;  %v3534_v15 = vld [vmem:[%s7060_s9 + $0x1b8] sm:$0xf]  ;;  %v4529_v17 = vld [vmem:[%s7060_s9 + $0x1cc] sm:$0xf0] }
  0x69   : > { %2563 = vmatpush.bf16.msra.mxu1 %v4011_v56  ;;  %v4517_v56 = vld [vmem:[%s7060_s9 + $0x16c] sm:$0xf0]  ;;  %v4083_v3 = vor.u32 %v4663_v53, %v4080_v54  ;;  %v3582_v54 = vld [vmem:[%s7060_s9 + $0x218] sm:$0xf]  ;;  %v3535_v24 = vor.u32 %v4529_v17, %v3534_v15  ;;  %v4523_v29 = vld [vmem:[%s7060_s9 + $0x19c] sm:$0xf0] }
  0x6a   : > { %2576 = vmatpush.bf16.msra.mxu2 %v4203_v57  ;;  %v4299_v57 = vor.u32 %v4717_v44, %v4296_v46  ;;  %v4595_v46 = vld [vmem:[%s7060_s9 + $0x3dc] sm:$0xf0]  ;;  %v4493_v53 = vld [vmem:[%s7060_s9 + $0xac] sm:$0xf0]  ;;  %v4182_v17 = vld [vmem:[%s7060_s9 + $0x6c8] sm:$0xf] }
  0x6b   : > { %2589 = vmatpush.bf16.msra.mxu3 %v4395_v1  ;;  %v4272_v1 = vld [vmem:[%s7060_s9 + $0x798] sm:$0xf0]  ;;  %v4625_v22 = vld [vmem:[%s7060_s9 + $0x4cc] sm:$0xf0]  ;;  %s3082_s19 = sshll.u32 %s3078_s16, 4  ;;  %s3052_s27 = scalar_lea.sflag [#allocation5], %s6976_s23  ;;  %s3083_s19 = int_to_ptr.hbm [resolvable:$true] %s3082_s19 }
  0x6c   : > { %2551 = vmatpush.bf16.msra.mxu0 %v3795_v2  ;;  %v3891_v2 = vor.u32 %v4615_v51, %v3888_v52  ;;  %v4275_v10 = vor.u32 %v4711_v63, %v4272_v1  ;;  %v3390_v51 = vld [vmem:[%s7060_s9 + $0x98] sm:$0xf]  ;;  %v3366_v63 = vld [vmem:[%s7060_s9 + $0x68] sm:$0xf]  ;;  %s4872_s2 = sshra.s32 %s3083_s19, 4  ;;  %s4878_s30 = scalar_lea.hbm %s7063_s12, 16  ;;  %s4873_s2 = int_to_ptr.hbm [resolvable:$true] %s4872_s2 }
  0x6d   : > { %2564 = vmatpush.bf16.msra.mxu1 %v3987_v5  ;;  %v4661_v5 = vld [vmem:[%s7060_s9 + $0x5ec] sm:$0xf0]  ;;  %s4874_s28 = scalar_lea.hbm %s4873_s2, 8  ;;  %p4879_p1 = scmp.lt.s32.totalorder %s4873_s2, %s7063_s12 }
  0x6e   : > { %2577 = vmatpush.bf16.msra.mxu2 %v4179_v6  ;;  %v3487_v6 = vor.u32 %v4517_v56, %v3486_v55  ;;  %v4541_v55 = vld [vmem:[%s7060_s9 + $0x22c] sm:$0xf0]  ;;  %v3991_v56 = vor.u32 %v4643_v48, %v3990_v47  ;;  %v4619_v47 = vld [vmem:[%s7060_s9 + $0x49c] sm:$0xf0]  ;;  %p4875_p12 = scmp.ne.s32.totalorder %s4873_s2, %s4874_s28  ;;  %p4880_p2 = scmp.lt.s32.totalorder %s4878_s30, %s4874_s28 }
  0x6f   : > { %2590 = vmatpush.bf16.msra.mxu3 %v4371_v13  ;;  %v4559_v13 = vld [vmem:[%s7060_s9 + $0x2bc] sm:$0xf0]  ;;  %v3583_v62 = vor.u32 %v4541_v55, %v3582_v54  ;;  %v4230_v54 = vld [vmem:[%s7060_s9 + $0x728] sm:$0xf] }
  0x70   : > { %2552 = vmatpush.bf16.msra.mxu0 %v3771_v14  ;;  %v4063_v14 = vor.u32 %v4661_v5, %v4062_v4  ;;  %v3655_v21 = vor.u32 %v4559_v13, %v3654_v12  ;;  %v4535_v4 = vld [vmem:[%s7060_s9 + $0x1fc] sm:$0xf0]  ;;  %v3967_v5 = vor.u32 %v4637_v60, %v3966_v59  ;;  %v3342_v12 = vld [vmem:[%s7060_s9 + $0x38] sm:$0xf]  ;;  %v4508_v59 = vld [vmem:[%s7060_s9 + $0x12c] sm:$0xf]  ;;  %p4876_p13 = pnand %p4875_p12, %p5075_p4  ;;  %p4881_p3 = por %p4880_p2, %p4879_p1 }
  0x71   : > { %2565 = vmatpush.bf16.msra.mxu1 %v3963_v18  ;;  %v4038_v18 = vld [vmem:[%s7060_s9 + $0x5a8] sm:$0xf]  ;;  %v4703_v55 = vld [vmem:[%s7060_s9 + $0x73c] sm:$0xf0]  ;;  %v3464_v60 = vld [vmem:[%s7060_s9 + $0x140] sm:$0xf0] }
  0x72   : > { %2578 = vmatpush.bf16.msra.mxu2 %v4155_v19  ;;  %v4655_v19 = vld [vmem:[%s7060_s9 + $0x5bc] sm:$0xf0]  ;;  %p4877_p0 = pneg %p4876_p13 }
  0x73   : > { %2591 = vmatpush.bf16.msra.mxu3 %v4347_v26  ;;  %v4553_v26 = vld [vmem:[%s7060_s9 + $0x28c] sm:$0xf0] }
  0x74   : > { %2553 = vmatpush.bf16.msra.mxu0 %v3747_v27  ;;  %v4039_v27 = vor.u32 %v4655_v19, %v4038_v18  ;;  %v3631_v37 = vor.u32 %v4553_v26, %v3630_v25  ;;  %v3726_v19 = vld [vmem:[%s7060_s9 + $0x338] sm:$0xf]  ;;  %v3318_v25 = vld [vmem:[%s7060_s9 + $0x8] sm:$0xf]  ;;  %v4475_v26 = vld [vmem:[%s7060_s9 + $0x1c] sm:$0xf0]  ;;  %p4882_p5 = pnand %p4881_p3, %p4877_p0 }
  0x75   : > { %2566 = vmatpush.bf16.msra.mxu1 %v3939_v33  ;;  %v4014_v33 = vld [vmem:[%s7060_s9 + $0x578] sm:$0xf] }
  0x76   : > { %2579 = vmatpush.bf16.msra.mxu2 %v4131_v34  ;;  %v4649_v34 = vld [vmem:[%s7060_s9 + $0x58c] sm:$0xf0] }
  0x77   : > { %2592 = vmatpush.bf16.msra.mxu3 %v4323_v43  ;;  %v4547_v43 = vld [vmem:[%s7060_s9 + $0x25c] sm:$0xf0]  ;;  %v4015_v44 = vor.u32 %v4649_v34, %v4014_v33  ;;  %v3702_v33 = vld [vmem:[%s7060_s9 + $0x308] sm:$0xf] }
  0x78   : > { %2554 = vmatpush.bf16.msra.mxu0 %v3723_v45  ;;  %v3798_v45 = vld [vmem:[%s7060_s9 + $0x3c8] sm:$0xf]  ;;  %v4571_v34 = vld [vmem:[%s7060_s9 + $0x31c] sm:$0xf0] }
  0x79   : > { %2567 = vmatpush.bf16.msra.mxu1 %v3915_v49  ;;  %v3415_v49 = vor.u32 %v4499_v41, %v3414_v38  ;;  %v3799_v52 = vor.u32 %v4595_v46, %v3798_v45  ;;  %v4709_v38 = vld [vmem:[%s7060_s9 + $0x76c] sm:$0xf0]  ;;  %v3894_v46 = vld [vmem:[%s7060_s9 + $0x488] sm:$0xf]  ;;  %v3703_v48 = vor.u32 %v4571_v34, %v3702_v33  ;;  %v4350_v34 = vld [vmem:[%s7060_s9 + $0x818] sm:$0xf] }
  0x7a   : > { %2580 = vmatpush.bf16.msra.mxu2 %v4107_v50  ;;  %v3607_v50 = vor.u32 %v4547_v43, %v3606_v42  ;;  %v4757_v41 = vld [vmem:[%s7060_s9 + $0x8ec] sm:$0xf0]  ;;  %v4514_v42 = vld [vmem:[%s7060_s9 + $0x15c] sm:$0xf]  ;;  %v3488_v43 = vld [vmem:[%s7060_s9 + $0x170] sm:$0xf0] }
  0x7b   : > { %2593 = vmatpush.bf16.msra.mxu3 %v4299_v57  ;;  %v3774_v57 = vld [vmem:[%s7060_s9 + $0x398] sm:$0xf]  ;;  %v4685_v33 = vld [vmem:[%s7060_s9 + $0x6ac] sm:$0xf0] }
  0x7c   : > { %2555 = vmatpush.bf16.msra.mxu0 %v3699_v61  ;;  %v3391_v61 = vor.u32 %v4493_v53, %v3390_v51  ;;  %v3775_v1 = vor.u32 %v4589_v58, %v3774_v57  ;;  %v3680_v51 = vld [vmem:[%s7060_s9 + $0x2f0] sm:$0xf0]  ;;  %v3491_v53 = vor.u32 %v4514_v42, %v3488_v43  ;;  %v3895_v57 = vor.u32 %v4619_v47, %v3894_v46  ;;  %v4751_v58 = vld [vmem:[%s7060_s9 + $0x8bc] sm:$0xf0]  ;;  %v4538_v42 = vld [vmem:[%s7060_s9 + $0x21c] sm:$0xf] }
  0x7d   : > { %2568 = vmatpush.bf16.msra.mxu1 %v3891_v2  ;;  %v4487_v2 = vld [vmem:[%s7060_s9 + $0x7c] sm:$0xf0]  ;;  %v3584_v43 = vld [vmem:[%s7060_s9 + $0x230] sm:$0xf0]  ;;  %v4134_v46 = vld [vmem:[%s7060_s9 + $0x668] sm:$0xf] }
  0x7e   : > { %2581 = vmatpush.bf16.msra.mxu2 %v4083_v3  ;;  %v3558_v3 = vld [vmem:[%s7060_s9 + $0x1e8] sm:$0xf]  ;;  %v4679_v47 = vld [vmem:[%s7060_s9 + $0x67c] sm:$0xf0] }
  0x7f   : > { %2594 = vmatpush.bf16.msra.mxu3 %v4275_v10  ;;  %2556 = vmatmul.bf16.vlgmr.msra.gmra.mxu0 %v5426_v31  ;;  %v3367_v10 = vor.u32 %v4487_v2, %v3366_v63  ;;  %v3559_v11 = vor.u32 %v4535_v4, %v3558_v3  ;;  %v4556_v63 = vld [vmem:[%s7060_s9 + $0x2ac] sm:$0xf]  ;;  %v3467_v3 = vor.u32 %v4508_v59, %v3464_v60  ;;  %v4206_v4 = vld [vmem:[%s7060_s9 + $0x6f8] sm:$0xf]  ;;  %v4673_v59 = vld [vmem:[%s7060_s9 + $0x64c] sm:$0xf0] }
  0x80   : > { %2600 = vmatpush.bf16.msrb.mxu0 %v3487_v6  ;;  %2569 = vmatmul.bf16.vlgmr.msra.gmra.mxu1 %v5428_v32  ;;  %v3750_v6 = vld [vmem:[%s7060_s9 + $0x368] sm:$0xf]  ;;  %v4302_v60 = vld [vmem:[%s7060_s9 + $0x7b8] sm:$0xf] }
  0x81   : > { %2613 = vmatpush.bf16.msrb.mxu1 %v3679_v7  ;;  %2582 = vmatmul.bf16.vlgmr.msra.gmra.mxu2 %v5558_v35  ;;  %v4583_v7 = vld [vmem:[%s7060_s9 + $0x37c] sm:$0xf0] }
  0x82   : > { %2626 = vmatpush.bf16.msrb.mxu2 %v3871_v9  ;;  %2595 = vmatmul.bf16.vlgmr.msra.gmra.mxu3 %v5569_v40  ;;  %v4631_v9 = vld [vmem:[%s7060_s9 + $0x4fc] sm:$0xf0]  ;;  %v3751_v13 = vor.u32 %v4583_v7, %v3750_v6  ;;  %v4398_v6 = vld [vmem:[%s7060_s9 + $0x878] sm:$0xf]  ;;  %v4745_v7 = vld [vmem:[%s7060_s9 + $0x88c] sm:$0xf0] }
  0x83   : > { %2639 = vmatpush.bf16.msrb.mxu3 %v4063_v14  ;;  %v4481_v14 = vld [vmem:[%s7060_s9 + $0x4c] sm:$0xf0]  ;;  %v3943_v18 = vor.u32 %v4631_v9, %v3942_v8  ;;  %v4502_v8 = vld [vmem:[%s7060_s9 + $0xfc] sm:$0xf]  ;;  %v3440_v9 = vld [vmem:[%s7060_s9 + $0x110] sm:$0xf0] }
  0x84   : > { %2601 = vmatpush.bf16.msrb.mxu0 %v3463_v20  ;;  %v4577_v20 = vld [vmem:[%s7060_s9 + $0x34c] sm:$0xf0]  ;;  %v3443_v15 = vor.u32 %v4502_v8, %v3440_v9  ;;  %v4278_v9 = vld [vmem:[%s7060_s9 + $0x788] sm:$0xf] }
  0x85   : > { %2614 = vmatpush.bf16.msrb.mxu1 %v3655_v21  ;;  %v3918_v21 = vld [vmem:[%s7060_s9 + $0x4b8] sm:$0xf]  ;;  %v3727_v28 = vor.u32 %v4577_v20, %v3726_v19  ;;  %v4374_v19 = vld [vmem:[%s7060_s9 + $0x848] sm:$0xf]  ;;  %v4739_v20 = vld [vmem:[%s7060_s9 + $0x85c] sm:$0xf0] }
  0x86   : > { %2627 = vmatpush.bf16.msrb.mxu2 %v3847_v23  ;;  %v3343_v23 = vor.u32 %v4481_v14, %v3342_v12  ;;  %v4550_v12 = vld [vmem:[%s7060_s9 + $0x27c] sm:$0xf]  ;;  %v4399_v14 = vor.u32 %v4745_v7, %v4398_v6  ;;  %v4667_v6 = vld [vmem:[%s7060_s9 + $0x61c] sm:$0xf0] }
  0x87   : > { %2640 = vmatpush.bf16.msrb.mxu3 %v4039_v27  ;;  %v3510_v27 = vld [vmem:[%s7060_s9 + $0x188] sm:$0xf] }
  0x88   : > { %2602 = vmatpush.bf16.msrb.mxu0 %v3439_v36  ;;  %v3919_v36 = vor.u32 %v4625_v22, %v3918_v21  ;;  %v3511_v45 = vor.u32 %v4523_v29, %v3510_v27  ;;  %v4496_v21 = vld [vmem:[%s7060_s9 + $0xcc] sm:$0xf]  ;;  %v3416_v22 = vld [vmem:[%s7060_s9 + $0xe0] sm:$0xf0]  ;;  %v4375_v27 = vor.u32 %v4739_v20, %v4374_v19  ;;  %v4158_v29 = vld [vmem:[%s7060_s9 + $0x698] sm:$0xf] }
  0x89   : > { %2615 = vmatpush.bf16.msrb.mxu1 %v3631_v37  ;;  %v4254_v37 = vld [vmem:[%s7060_s9 + $0x758] sm:$0xf]  ;;  %v4706_v19 = vld [vmem:[%s7060_s9 + $0x75c] sm:$0xf] }
  0x8a   : > { %2628 = vmatpush.bf16.msrb.mxu2 %v3823_v39  ;;  %v4446_v39 = vld [vmem:[%s7060_s9 + $0x8d8] sm:$0xf] }
  0x8b   : > { %2641 = vmatpush.bf16.msrb.mxu3 %v4015_v44  ;;  %v3319_v44 = vor.u32 %v4475_v26, %v3318_v25  ;;  %v4544_v25 = vld [vmem:[%s7060_s9 + $0x24c] sm:$0xf]  ;;  %v3608_v26 = vld [vmem:[%s7060_s9 + $0x260] sm:$0xf0] }
  0x8c   : > { %2603 = vmatpush.bf16.msrb.mxu0 %v3415_v49  ;;  %v4255_v49 = vor.u32 %v4709_v38, %v4254_v37  ;;  %v4490_v37 = vld [vmem:[%s7060_s9 + $0x9c] sm:$0xf]  ;;  %v3392_v38 = vld [vmem:[%s7060_s9 + $0xb0] sm:$0xf0] }
  0x8d   : > { %2616 = vmatpush.bf16.msrb.mxu1 %v3607_v50  ;;  %v4562_v50 = vld [vmem:[%s7060_s9 + $0x2dc] sm:$0xf] }
  0x8e   : > { %2629 = vmatpush.bf16.msrb.mxu2 %v3799_v52  ;;  %v4447_v52 = vor.u32 %v4757_v41, %v4446_v39  ;;  %v3611_v39 = vor.u32 %v4544_v25, %v3608_v26  ;;  %v4159_v41 = vor.u32 %v4685_v33, %v4158_v29  ;;  %v4754_v26 = vld [vmem:[%s7060_s9 + $0x8dc] sm:$0xf]  ;;  %v4604_v33 = vld [vmem:[%s7060_s9 + $0x42c] sm:$0xf] }
  0x8f   : > { %2642 = vmatpush.bf16.msrb.mxu3 %v3991_v56  ;;  %v4422_v56 = vld [vmem:[%s7060_s9 + $0x8a8] sm:$0xf] }
  0x90   : > { %2604 = vmatpush.bf16.msrb.mxu0 %v3391_v61  ;;  %v3683_v61 = vor.u32 %v4562_v50, %v3680_v51  ;;  %v4423_v2 = vor.u32 %v4751_v58, %v4422_v56  ;;  %v4484_v50 = vld [vmem:[%s7060_s9 + $0x6c] sm:$0xf]  ;;  %v3368_v51 = vld [vmem:[%s7060_s9 + $0x80] sm:$0xf0]  ;;  %v4110_v58 = vld [vmem:[%s7060_s9 + $0x638] sm:$0xf] }
  0x91   : > { %2617 = vmatpush.bf16.msrb.mxu1 %v3583_v62  ;;  %v4231_v62 = vor.u32 %v4703_v55, %v4230_v54  ;;  %v4532_v54 = vld [vmem:[%s7060_s9 + $0x1ec] sm:$0xf]  ;;  %v3560_v55 = vld [vmem:[%s7060_s9 + $0x200] sm:$0xf0] }
  0x92   : > { %2630 = vmatpush.bf16.msrb.mxu2 %v3775_v1  ;;  %v3656_v1 = vld [vmem:[%s7060_s9 + $0x2c0] sm:$0xf0] }
  0x93   : > { %2643 = vmatpush.bf16.msrb.mxu3 %v3967_v5  ;;  %v4697_v5 = vld [vmem:[%s7060_s9 + $0x70c] sm:$0xf0] }
  0x94   : > { %2605 = vmatpush.bf16.msrb.mxu0 %v3367_v10  ;;  %v3659_v10 = vor.u32 %v4556_v63, %v3656_v1  ;;  %v3344_v63 = vld [vmem:[%s7060_s9 + $0x50] sm:$0xf0]  ;;  %v3563_v1 = vor.u32 %v4532_v54, %v3560_v55  ;;  %v4694_v54 = vld [vmem:[%s7060_s9 + $0x6fc] sm:$0xf] }
  0x95   : > { %2618 = vmatpush.bf16.msrb.mxu1 %v3559_v11  ;;  %v4207_v11 = vor.u32 %v4697_v5, %v4206_v4  ;;  %v3536_v4 = vld [vmem:[%s7060_s9 + $0x1d0] sm:$0xf0]  ;;  %v4086_v5 = vld [vmem:[%s7060_s9 + $0x608] sm:$0xf] }
  0x96   : > { %2631 = vmatpush.bf16.msrb.mxu2 %v3751_v13  ;;  %v3632_v13 = vld [vmem:[%s7060_s9 + $0x290] sm:$0xf0]  ;;  %v4087_v20 = vor.u32 %v4667_v6, %v4086_v5  ;;  %v4736_v5 = vld [vmem:[%s7060_s9 + $0x84c] sm:$0xf]  ;;  %v4376_v6 = vld [vmem:[%s7060_s9 + $0x860] sm:$0xf0] }
  0x97   : > { %2644 = vmatpush.bf16.msrb.mxu3 %v3943_v18  ;;  %v4691_v18 = vld [vmem:[%s7060_s9 + $0x6dc] sm:$0xf0]  ;;  %v4208_v55 = vld [vmem:[%s7060_s9 + $0x710] sm:$0xf0] }
  0x98   : > { %2606 = vmatpush.bf16.msrb.mxu0 %v3343_v23  ;;  %v3635_v23 = vor.u32 %v4550_v12, %v3632_v13  ;;  %v3320_v12 = vld [vmem:[%s7060_s9 + $0x20] sm:$0xf0]  ;;  %v4610_v13 = vld [vmem:[%s7060_s9 + $0x45c] sm:$0xf] }
  0x99   : > { %2619 = vmatpush.bf16.msrb.mxu1 %v3535_v24  ;;  %v4183_v24 = vor.u32 %v4691_v18, %v4182_v17  ;;  %v4658_v17 = vld [vmem:[%s7060_s9 + $0x5dc] sm:$0xf]  ;;  %v4064_v18 = vld [vmem:[%s7060_s9 + $0x5f0] sm:$0xf0] }
  0x9a   : > { %2632 = vmatpush.bf16.msrb.mxu2 %v3727_v28  ;;  %v3419_v28 = vor.u32 %v4496_v21, %v3416_v22  ;;  %v4256_v21 = vld [vmem:[%s7060_s9 + $0x770] sm:$0xf0]  ;;  %v4520_v22 = vld [vmem:[%s7060_s9 + $0x18c] sm:$0xf]  ;;  %v4067_v29 = vor.u32 %v4658_v17, %v4064_v18  ;;  %v6238_v18 = vld [vmem:[%s7061_s10] sm:$0x3f] }
  0x9b   : > { %2645 = vmatpush.bf16.msrb.mxu3 %v3919_v36  ;;  %v4733_v36 = vld [vmem:[%s7060_s9 + $0x82c] sm:$0xf0]  ;;  %v4160_v17 = vld [vmem:[%s7060_s9 + $0x6b0] sm:$0xf0] }
  0x9c   : > { %2607 = vmatpush.bf16.msrb.mxu0 %v3319_v44  ;;  %v4351_v44 = vor.u32 %v4733_v36, %v4350_v34  ;;  %v4259_v34 = vor.u32 %v4706_v19, %v4256_v21  ;;  %v4730_v19 = vld [vmem:[%s7060_s9 + $0x81c] sm:$0xf] }
  0x9d   : > { %2620 = vmatpush.bf16.msrb.mxu1 %v3511_v45  ;;  %v3395_v45 = vor.u32 %v4490_v37, %v3392_v38  ;;  %v3848_v37 = vld [vmem:[%s7060_s9 + $0x440] sm:$0xf0]  ;;  %v4652_v38 = vld [vmem:[%s7060_s9 + $0x5ac] sm:$0xf] }
  0x9e   : > { %2633 = vmatpush.bf16.msrb.mxu2 %v3703_v48  ;;  %v4326_v48 = vld [vmem:[%s7060_s9 + $0x7e8] sm:$0xf] }
  0x9f   : > { %2646 = vmatpush.bf16.msrb.mxu3 %v3895_v57  ;;  %2608 = vmatmul.bf16.vlgmr.msrb.gmra.mxu0 %v5399_v16  ;;  %v3371_v57 = vor.u32 %v4484_v50, %v3368_v51  ;;  %v3824_v50 = vld [vmem:[%s7060_s9 + $0x410] sm:$0xf0]  ;;  %v4646_v51 = vld [vmem:[%s7060_s9 + $0x57c] sm:$0xf] }
  0xa0   : > { %2652 = vmatpush.bf16.msra.mxu0 %v4255_v49  ;;  %2621 = vmatmul.bf16.vlgmr.msrb.gmra.mxu1 %v5424_v30  ;;  %v4727_v49 = vld [vmem:[%s7060_s9 + $0x7fc] sm:$0xf0] }
  0xa1   : > { %2665 = vmatpush.bf16.msra.mxu1 %v4447_v52  ;;  %2634 = vmatmul.bf16.vlgmr.msrb.gmra.mxu2 %v5426_v31  ;;  %v3587_v52 = vor.u32 %v4538_v42, %v3584_v43  ;;  %v4327_v56 = vor.u32 %v4727_v49, %v4326_v48  ;;  %v4700_v42 = vld [vmem:[%s7060_s9 + $0x72c] sm:$0xf]  ;;  %v4232_v43 = vld [vmem:[%s7060_s9 + $0x740] sm:$0xf0]  ;;  %v4598_v48 = vld [vmem:[%s7060_s9 + $0x3fc] sm:$0xf] }
  0xa2   : > { %2678 = vmatpush.bf16.msra.mxu2 %v3491_v53  ;;  %2647 = vmatmul.bf16.vlgmr.msrb.gmra.mxu3 %v5428_v32  ;;  %v4135_v53 = vor.u32 %v4679_v47, %v4134_v46  ;;  %v3851_v46 = vor.u32 %v4604_v33, %v3848_v37  ;;  %v4235_v49 = vor.u32 %v4700_v42, %v4232_v43  ;;  %v4676_v33 = vld [vmem:[%s7060_s9 + $0x66c] sm:$0xf]  ;;  %v4328_v37 = vld [vmem:[%s7060_s9 + $0x800] sm:$0xf0]  ;;  %v4574_v42 = vld [vmem:[%s7060_s9 + $0x33c] sm:$0xf] }
  0xa3   : > { %2691 = vmatpush.bf16.msra.mxu3 %v3683_v61  ;;  %v4721_v61 = vld [vmem:[%s7060_s9 + $0x7cc] sm:$0xf0] }
  0xa4   : > { %2653 = vmatpush.bf16.msra.mxu0 %v4231_v62  ;;  %v4478_v62 = vld [vmem:[%s7060_s9 + $0x3c] sm:$0xf]  ;;  %v4303_v7 = vor.u32 %v4721_v61, %v4302_v60  ;;  %v4592_v60 = vld [vmem:[%s7060_s9 + $0x3cc] sm:$0xf]  ;;  %v4211_v61 = vor.u32 %v4694_v54, %v4208_v55  ;;  %v4304_v54 = vld [vmem:[%s7060_s9 + $0x7d0] sm:$0xf0] }
  0xa5   : > { %2666 = vmatpush.bf16.msra.mxu1 %v4423_v2  ;;  %v4526_v2 = vld [vmem:[%s7060_s9 + $0x1bc] sm:$0xf]  ;;  %v3347_v8 = vor.u32 %v4478_v62, %v3344_v63  ;;  %v3800_v62 = vld [vmem:[%s7060_s9 + $0x3e0] sm:$0xf0]  ;;  %v4640_v63 = vld [vmem:[%s7060_s9 + $0x54c] sm:$0xf] }
  0xa6   : > { %2679 = vmatpush.bf16.msra.mxu2 %v3467_v3  ;;  %v4111_v3 = vor.u32 %v4673_v59, %v4110_v58  ;;  %v3827_v58 = vor.u32 %v4598_v48, %v3824_v50  ;;  %v4112_v50 = vld [vmem:[%s7060_s9 + $0x650] sm:$0xf0] }
  0xa7   : > { %2692 = vmatpush.bf16.msra.mxu3 %v3659_v10  ;;  %v4715_v10 = vld [vmem:[%s7060_s9 + $0x79c] sm:$0xf0] }
  0xa8   : > { %2654 = vmatpush.bf16.msra.mxu0 %v4207_v11  ;;  %v4472_v11 = vld [vmem:[%s7060_s9 + $0xc] sm:$0xf] }
  0xa9   : > { %2667 = vmatpush.bf16.msra.mxu1 %v4399_v14  ;;  %v3872_v14 = vld [vmem:[%s7060_s9 + $0x470] sm:$0xf0]  ;;  %v3323_v25 = vor.u32 %v4472_v11, %v3320_v12  ;;  %v4634_v12 = vld [vmem:[%s7060_s9 + $0x51c] sm:$0xf] }
  0xaa   : > { %2680 = vmatpush.bf16.msra.mxu2 %v3443_v15  ;;  %v3539_v15 = vor.u32 %v4526_v2, %v3536_v4  ;;  %v4184_v4 = vld [vmem:[%s7060_s9 + $0x6e0] sm:$0xf0]  ;;  %v3776_v11 = vld [vmem:[%s7060_s9 + $0x3b0] sm:$0xf0] }
  0xab   : > { %2693 = vmatpush.bf16.msra.mxu3 %v3635_v23  ;;  %v3512_v23 = vld [vmem:[%s7060_s9 + $0x1a0] sm:$0xf0] }
  0xac   : > { %2655 = vmatpush.bf16.msra.mxu0 %v4183_v24  ;;  %v4279_v24 = vor.u32 %v4715_v10, %v4278_v9  ;;  %v3515_v36 = vor.u32 %v4520_v22, %v3512_v23  ;;  %v4586_v9 = vld [vmem:[%s7060_s9 + $0x39c] sm:$0xf]  ;;  %v4580_v23 = vld [vmem:[%s7060_s9 + $0x36c] sm:$0xf] }
  0xad   : > { %2668 = vmatpush.bf16.msra.mxu1 %v4375_v27  ;;  %v4448_v27 = vld [vmem:[%s7060_s9 + $0x8f0] sm:$0xf0]  ;;  %v3779_v21 = vor.u32 %v4586_v9, %v3776_v11  ;;  %v4280_v11 = vld [vmem:[%s7060_s9 + $0x7a0] sm:$0xf0] }
  0xae   : > { %2681 = vmatpush.bf16.msra.mxu2 %v3419_v28  ;;  %v3875_v28 = vor.u32 %v4610_v13, %v3872_v14  ;;  %v3968_v13 = vld [vmem:[%s7060_s9 + $0x530] sm:$0xf0]  ;;  %v4379_v14 = vor.u32 %v4736_v5, %v4376_v6  ;;  %v4566_v5 = vld [vmem:[%s7060_s9 + $0x2f4] sm:$0xf0]  ;;  %v3878_v6 = vld [vmem:[%s7060_s9 + $0x460] sm:$0xf] }
  0xaf   : > { %2694 = vmatpush.bf16.msra.mxu3 %v3611_v39  ;;  %v4040_v39 = vld [vmem:[%s7060_s9 + $0x5c0] sm:$0xf0]  ;;  %v3971_v22 = vor.u32 %v4634_v12, %v3968_v13 }
  0xb0   : > { %2656 = vmatpush.bf16.msra.mxu0 %v4159_v41  ;;  %v4451_v41 = vor.u32 %v4754_v26, %v4448_v27  ;;  %v4043_v47 = vor.u32 %v4652_v38, %v4040_v39  ;;  %v4628_v26 = vld [vmem:[%s7060_s9 + $0x4ec] sm:$0xf]  ;;  %v3944_v27 = vld [vmem:[%s7060_s9 + $0x500] sm:$0xf0] }
  0xb1   : > { %2669 = vmatpush.bf16.msra.mxu1 %v4351_v44  ;;  %v4748_v44 = vld [vmem:[%s7060_s9 + $0x8ac] sm:$0xf]  ;;  %v3947_v39 = vor.u32 %v4628_v26, %v3944_v27 }
  0xb2   : > { %2682 = vmatpush.bf16.msra.mxu2 %v3395_v45  ;;  %v4424_v45 = vld [vmem:[%s7060_s9 + $0x8c0] sm:$0xf0] }
  0xb3   : > { %2695 = vmatpush.bf16.msra.mxu3 %v3587_v52  ;;  %v4016_v52 = vld [vmem:[%s7060_s9 + $0x590] sm:$0xf0] }
  0xb4   : > { %2657 = vmatpush.bf16.msra.mxu0 %v4135_v53  ;;  %v4427_v53 = vor.u32 %v4748_v44, %v4424_v45  ;;  %v4019_v59 = vor.u32 %v4646_v51, %v4016_v52  ;;  %v3728_v45 = vld [vmem:[%s7060_s9 + $0x350] sm:$0xf0] }
  0xb5   : > { %2670 = vmatpush.bf16.msra.mxu1 %v4327_v56  ;;  %v4742_v56 = vld [vmem:[%s7060_s9 + $0x87c] sm:$0xf]  ;;  %v3731_v55 = vor.u32 %v4574_v42, %v3728_v45 }
  0xb6   : > { %2683 = vmatpush.bf16.msra.mxu2 %v3371_v57  ;;  %v4400_v57 = vld [vmem:[%s7060_s9 + $0x890] sm:$0xf0] }
  0xb7   : > { %2696 = vmatpush.bf16.msra.mxu3 %v3563_v1  ;;  %v3992_v1 = vld [vmem:[%s7060_s9 + $0x560] sm:$0xf0]  ;;  %v4403_v2 = vor.u32 %v4742_v56, %v4400_v57  ;;  %v4568_v57 = vld [vmem:[%s7060_s9 + $0x30c] sm:$0xf] }
  0xb8   : > { %2658 = vmatpush.bf16.msra.mxu0 %v4111_v3  ;;  %v4688_v3 = vld [vmem:[%s7060_s9 + $0x6cc] sm:$0xf] }
  0xb9   : > { %2671 = vmatpush.bf16.msra.mxu1 %v4303_v7  ;;  %v3803_v7 = vor.u32 %v4592_v60, %v3800_v62  ;;  %v4187_v10 = vor.u32 %v4688_v3, %v4184_v4  ;;  %v4664_v62 = vld [vmem:[%s7060_s9 + $0x60c] sm:$0xf]  ;;  %v4518_v3 = vld [vmem:[%s7060_s9 + $0x174] sm:$0xf0]  ;;  %v3686_v4 = vld [vmem:[%s7060_s9 + $0x2e0] sm:$0xf] }
  0xba   : > { %2684 = vmatpush.bf16.msra.mxu2 %v3347_v8  ;;  %v3995_v8 = vor.u32 %v4640_v63, %v3992_v1  ;;  %v4088_v63 = vld [vmem:[%s7060_s9 + $0x620] sm:$0xf0] }
  0xbb   : > { %2697 = vmatpush.bf16.msra.mxu3 %v3539_v15  ;;  %v4682_v15 = vld [vmem:[%s7060_s9 + $0x69c] sm:$0xf] }
  0xbc   : > { %2659 = vmatpush.bf16.msra.mxu0 %v4087_v20  ;;  %v4352_v20 = vld [vmem:[%s7060_s9 + $0x830] sm:$0xf0] }
  0xbd   : > { %2672 = vmatpush.bf16.msra.mxu1 %v4279_v24  ;;  %v3752_v24 = vld [vmem:[%s7060_s9 + $0x380] sm:$0xf0] }
  0xbe   : > { %2685 = vmatpush.bf16.msra.mxu2 %v3323_v25  ;;  %v4163_v25 = vor.u32 %v4682_v15, %v4160_v17  ;;  %v3755_v38 = vor.u32 %v4580_v23, %v3752_v24  ;;  %v4070_v17 = vld [vmem:[%s7060_s9 + $0x5e0] sm:$0xf]  ;;  %v3470_v23 = vld [vmem:[%s7060_s9 + $0x130] sm:$0xf]  ;;  %v4512_v24 = vld [vmem:[%s7060_s9 + $0x144] sm:$0xf0] }
  0xbf   : > { %2698 = vmatpush.bf16.msra.mxu3 %v3515_v36  ;;  %2660 = vmatmul.bf16.vlgmr.msra.gmra.mxu0 %v5558_v35  ;;  %v4724_v36 = vld [vmem:[%s7060_s9 + $0x7ec] sm:$0xf] }
  0xc0   : > { %2704 = vmatpush.bf16.msrb.mxu0 %v3875_v28  ;;  %2673 = vmatmul.bf16.vlgmr.msra.gmra.mxu1 %v5569_v40  ;;  %v992_v28 = vperm.slane %v6238_v18, 0  ;;  %v4331_v48 = vor.u32 %v4724_v36, %v4328_v37  ;;  %v3854_v36 = vld [vmem:[%s7060_s9 + $0x430] sm:$0xf]  ;;  %v4608_v37 = vld [vmem:[%s7060_s9 + $0x444] sm:$0xf0] }
  0xc1   : > { %2717 = vmatpush.bf16.msrb.mxu1 %v4067_v29  ;;  %2686 = vmatmul.bf16.vlgmr.msra.gmra.mxu2 %v5399_v16  ;;  %v4355_v29 = vor.u32 %v4730_v19, %v4352_v20  ;;  %v2466_v51 = vpop.f32.mrf.mxu1  ;;  %v4662_v19 = vld [vmem:[%s7060_s9 + $0x5f4] sm:$0xf0]  ;;  %v3855_v45 = vor.u32 %v4608_v37, %v3854_v36  ;;  %v4584_v36 = vld [vmem:[%s7060_s9 + $0x384] sm:$0xf0] }
  0xc2   : > { %2730 = vmatpush.bf16.msrb.mxu2 %v4259_v34  ;;  %2699 = vmatmul.bf16.vlgmr.msra.gmra.mxu3 %v5424_v30  ;;  %v4136_v34 = vld [vmem:[%s7060_s9 + $0x680] sm:$0xf0] }
  0xc3   : > { %2743 = vmatpush.bf16.msrb.mxu3 %v4451_v41  ;;  %v2453_v41 = vpop.f32.mrf.mxu0  ;;  %v4139_v43 = vor.u32 %v4676_v33, %v4136_v34  ;;  %v4071_v34 = vor.u32 %v4662_v19, %v4070_v17  ;;  %v4590_v17 = vld [vmem:[%s7060_s9 + $0x3b4] sm:$0xf0] }
  0xc4   : > { %2705 = vmatpush.bf16.msrb.mxu0 %v3851_v46  ;;  %v2454_v44 = vadd.f32 %v2453_v41, %v992_v28  ;;  %v4622_v46 = vld [vmem:[%s7060_s9 + $0x4bc] sm:$0xf]  ;;  %v3662_v28 = vld [vmem:[%s7060_s9 + $0x2b0] sm:$0xf]  ;;  %v4656_v41 = vld [vmem:[%s7060_s9 + $0x5c4] sm:$0xf0] }
  0xc5   : > { %2718 = vmatpush.bf16.msrb.mxu1 %v4043_v47  ;;  %v3920_v47 = vld [vmem:[%s7060_s9 + $0x4d0] sm:$0xf0] }
  0xc6   : > { %2731 = vmatpush.bf16.msrb.mxu2 %v4235_v49  ;;  %v4670_v49 = vld [vmem:[%s7060_s9 + $0x63c] sm:$0xf]  ;;  %v2467_v52 = vadd.f32 %v2466_v51, %v2454_v44  ;;  %v3923_v56 = vor.u32 %v4622_v46, %v3920_v47  ;;  %v4506_v44 = vld [vmem:[%s7060_s9 + $0x114] sm:$0xf0]  ;;  %v3638_v46 = vld [vmem:[%s7060_s9 + $0x280] sm:$0xf] }
  0xc7   : > { %2744 = vmatpush.bf16.msrb.mxu3 %v4427_v53  ;;  %v4718_v53 = vld [vmem:[%s7060_s9 + $0x7bc] sm:$0xf]  ;;  %v4115_v60 = vor.u32 %v4670_v49, %v4112_v50  ;;  %v4554_v47 = vld [vmem:[%s7060_s9 + $0x294] sm:$0xf0]  ;;  %v3830_v49 = vld [vmem:[%s7060_s9 + $0x400] sm:$0xf] }
  0xc8   : > { %2706 = vmatpush.bf16.msrb.mxu0 %v3827_v58  ;;  %v3704_v58 = vld [vmem:[%s7060_s9 + $0x320] sm:$0xf0]  ;;  %v4307_v1 = vor.u32 %v4718_v53, %v4304_v54  ;;  %v2479_v13 = vpop.f32.mrf.mxu2  ;;  %v4602_v50 = vld [vmem:[%s7060_s9 + $0x414] sm:$0xf0]  ;;  %v4022_v53 = vld [vmem:[%s7060_s9 + $0x580] sm:$0xf] }
  0xc9   : > { %2719 = vmatpush.bf16.msrb.mxu1 %v4019_v59  ;;  %v4616_v59 = vld [vmem:[%s7060_s9 + $0x48c] sm:$0xf]  ;;  %v2480_v20 = vadd.f32 %v2479_v13, %v2467_v52  ;;  %v2492_v26 = vpop.f32.mrf.mxu3  ;;  %v4650_v54 = vld [vmem:[%s7060_s9 + $0x594] sm:$0xf0] }
  0xca   : > { %2732 = vmatpush.bf16.msrb.mxu2 %v4211_v61  ;;  %v3896_v61 = vld [vmem:[%s7060_s9 + $0x4a0] sm:$0xf0]  ;;  %v4542_v13 = vld [vmem:[%s7060_s9 + $0x234] sm:$0xf0] }
  0xcb   : > { %2745 = vmatpush.bf16.msrb.mxu3 %v4403_v2  ;;  %v3494_v2 = vld [vmem:[%s7060_s9 + $0x160] sm:$0xf]  ;;  %v3899_v9 = vor.u32 %v4616_v59, %v3896_v61  ;;  %v2455_v12 = vpop.f32.mrf.mxu0  ;;  %v2493_v33 = vadd.f32 %v2492_v26, %v2480_v20  ;;  %v3831_v59 = vor.u32 %v4602_v50, %v3830_v49  ;;  %v4548_v61 = vld [vmem:[%s7060_s9 + $0x264] sm:$0xf0] }
  0xcc   : > { %2707 = vmatpush.bf16.msrb.mxu0 %v3803_v7  ;;  %v4614_v7 = vld [vmem:[%s7060_s9 + $0x474] sm:$0xf0]  ;;  %v3495_v15 = vor.u32 %v4518_v3, %v3494_v2  ;;  %v3998_v3 = vld [vmem:[%s7060_s9 + $0x550] sm:$0xf]  ;;  %v3590_v12 = vld [vmem:[%s7060_s9 + $0x220] sm:$0xf] }
  0xcd   : > { %2720 = vmatpush.bf16.msrb.mxu1 %v3995_v8  ;;  %v3707_v8 = vor.u32 %v4568_v57, %v3704_v58  ;;  %v4500_v57 = vld [vmem:[%s7060_s9 + $0xe4] sm:$0xf0] }
  0xce   : > { %2733 = vmatpush.bf16.msrb.mxu2 %v4187_v10  ;;  %v4712_v10 = vld [vmem:[%s7060_s9 + $0x78c] sm:$0xf] }
  0xcf   : > { %2746 = vmatpush.bf16.msrb.mxu3 %v4379_v14  ;;  %v4091_v14 = vor.u32 %v4664_v62, %v4088_v63  ;;  %v4283_v27 = vor.u32 %v4712_v10, %v4280_v11  ;;  %v4023_v62 = vor.u32 %v4650_v54, %v4022_v53  ;;  %v3806_v63 = vld [vmem:[%s7060_s9 + $0x3d0] sm:$0xf]  ;;  %v4578_v53 = vld [vmem:[%s7060_s9 + $0x354] sm:$0xf0]  ;;  %v3926_v54 = vld [vmem:[%s7060_s9 + $0x4c0] sm:$0xf] }
  0xd0   : > { %2708 = vmatpush.bf16.msrb.mxu0 %v3779_v21  ;;  %v3687_v21 = vor.u32 %v4566_v5, %v3686_v4  ;;  %v2481_v51 = vpop.f32.mrf.mxu2  ;;  %v4644_v4 = vld [vmem:[%s7060_s9 + $0x564] sm:$0xf0] }
  0xd1   : > { %2721 = vmatpush.bf16.msrb.mxu1 %v3971_v22  ;;  %v3879_v22 = vor.u32 %v4614_v7, %v3878_v6  ;;  %v2494_v58 = vpop.f32.mrf.mxu3  ;;  %v3398_v7 = vld [vmem:[%s7060_s9 + $0xa0] sm:$0xf] }
  0xd2   : > { %2734 = vmatpush.bf16.msrb.mxu2 %v4163_v25  ;;  %v2468_v25 = vpop.f32.mrf.mxu1  ;;  %v3326_v58 = vld [vmem:[%s7060_s9 + $0x10] sm:$0xf] }
  0xd3   : > { %2747 = vmatpush.bf16.msrb.mxu3 %v4355_v29  ;;  %v4560_v29 = vld [vmem:[%s7060_s9 + $0x2c4] sm:$0xf0] }
  0xd4   : > { %2709 = vmatpush.bf16.msrb.mxu0 %v3755_v38  ;;  %v3471_v38 = vor.u32 %v4512_v24, %v3470_v23  ;;  %v3663_v42 = vor.u32 %v4560_v29, %v3662_v28  ;;  %v3591_v23 = vor.u32 %v4542_v13, %v3590_v12  ;;  %v3374_v24 = vld [vmem:[%s7060_s9 + $0x70] sm:$0xf]  ;;  %v4488_v25 = vld [vmem:[%s7060_s9 + $0x84] sm:$0xf0]  ;;  %v993_v29 = vperm.slane %v6238_v18, 1 }
  0xd5   : > { %2722 = vmatpush.bf16.msrb.mxu1 %v3947_v39  ;;  %v4046_v39 = vld [vmem:[%s7060_s9 + $0x5b0] sm:$0xf]  ;;  %v4536_v28 = vld [vmem:[%s7060_s9 + $0x204] sm:$0xf0]  ;;  %v3375_v37 = vor.u32 %v4488_v25, %v3374_v24 }
  0xd6   : > { %2735 = vmatpush.bf16.msrb.mxu2 %v4139_v43  ;;  %v3446_v43 = vld [vmem:[%s7060_s9 + $0x100] sm:$0xf]  ;;  %v3902_v12 = vld [vmem:[%s7060_s9 + $0x490] sm:$0xf]  ;;  %v4620_v13 = vld [vmem:[%s7060_s9 + $0x4a4] sm:$0xf0] }
  0xd7   : > { %2748 = vmatpush.bf16.msrb.mxu3 %v4331_v48  ;;  %v4047_v48 = vor.u32 %v4656_v41, %v4046_v39  ;;  %v3447_v52 = vor.u32 %v4506_v44, %v3446_v43  ;;  %v4632_v39 = vld [vmem:[%s7060_s9 + $0x504] sm:$0xf0]  ;;  %v4482_v43 = vld [vmem:[%s7060_s9 + $0x54] sm:$0xf0]  ;;  %v4238_v24 = vld [vmem:[%s7060_s9 + $0x730] sm:$0xf] }
  0xd8   : > { %2710 = vmatpush.bf16.msrb.mxu0 %v3731_v55  ;;  %v3639_v55 = vor.u32 %v4554_v47, %v3638_v46  ;;  %v3542_v47 = vld [vmem:[%s7060_s9 + $0x1c0] sm:$0xf]  ;;  %v4704_v25 = vld [vmem:[%s7060_s9 + $0x744] sm:$0xf0] }
  0xd9   : > { %2723 = vmatpush.bf16.msrb.mxu1 %v3923_v56  ;;  %v3422_v56 = vld [vmem:[%s7060_s9 + $0xd0] sm:$0xf] }
  0xda   : > { %2736 = vmatpush.bf16.msrb.mxu2 %v4115_v60  ;;  %v3614_v60 = vld [vmem:[%s7060_s9 + $0x250] sm:$0xf]  ;;  %v3423_v2 = vor.u32 %v4500_v57, %v3422_v56  ;;  %v4626_v57 = vld [vmem:[%s7060_s9 + $0x4d4] sm:$0xf0] }
  0xdb   : > { %2749 = vmatpush.bf16.msrb.mxu3 %v4307_v1  ;;  %v4596_v1 = vld [vmem:[%s7060_s9 + $0x3e4] sm:$0xf0]  ;;  %v3615_v6 = vor.u32 %v4548_v61, %v3614_v60 }
  0xdc   : > { %2711 = vmatpush.bf16.msrb.mxu0 %v3707_v8  ;;  %v2505_v5 = vpop.f32.mrf.mxu0  ;;  %v4494_v8 = vld [vmem:[%s7060_s9 + $0xb4] sm:$0xf0]  ;;  %v3807_v10 = vor.u32 %v4596_v1, %v3806_v63  ;;  %v4524_v63 = vld [vmem:[%s7060_s9 + $0x1a4] sm:$0xf0]  ;;  %v3710_v1 = vld [vmem:[%s7060_s9 + $0x310] sm:$0xf] }
  0xdd   : > { %2724 = vmatpush.bf16.msrb.mxu1 %v3899_v9  ;;  %v2506_v9 = vadd.f32 %v2505_v5, %v2493_v33  ;;  %v2518_v11 = vpop.f32.mrf.mxu1  ;;  %v3399_v20 = vor.u32 %v4494_v8, %v3398_v7  ;;  %v4710_v5 = vld [vmem:[%s7060_s9 + $0x774] sm:$0xf0]  ;;  %v4454_v7 = vld [vmem:[%s7060_s9 + $0x8e0] sm:$0xf] }
  0xde   : > { %2737 = vmatpush.bf16.msrb.mxu2 %v4091_v14  ;;  %v3999_v14 = vor.u32 %v4644_v4, %v3998_v3  ;;  %v4572_v3 = vld [vmem:[%s7060_s9 + $0x324] sm:$0xf0]  ;;  %v4262_v4 = vld [vmem:[%s7060_s9 + $0x760] sm:$0xf]  ;;  %v4758_v8 = vld [vmem:[%s7060_s9 + $0x8f4] sm:$0xf0] }
  0xdf   : > { %2750 = vmatpush.bf16.msrb.mxu3 %v4283_v27  ;;  %2712 = vmatmul.bf16.vlgmr.msrb.gmra.mxu0 %v5426_v31  ;;  %v6437_v19 = vadd.f32 %v2518_v11, %v2506_v9  ;;  %v3566_v27 = vld [vmem:[%s7060_s9 + $0x1f0] sm:$0xf]  ;;  %v4515_v9 = vld [vmem:[%s7060_s9 + $0x164] sm:$0xf]  ;;  %v3496_v11 = vld [vmem:[%s7060_s9 + $0x178] sm:$0xf0] }
  0xe0   : > { %2756 = vmatpush.bf16.msra.mxu0 %v3495_v15  ;;  %2725 = vmatmul.bf16.vlgmr.msrb.gmra.mxu1 %v5428_v32  ;;  %v3782_v15 = vld [vmem:[%s7060_s9 + $0x3a0] sm:$0xf]  ;;  %v3567_v41 = vor.u32 %v4536_v28, %v3566_v27  ;;  %v3903_v27 = vor.u32 %v4620_v13, %v3902_v12  ;;  %v4430_v28 = vld [vmem:[%s7060_s9 + $0x8b0] sm:$0xf]  ;;  %v4491_v12 = vld [vmem:[%s7060_s9 + $0xa4] sm:$0xf] }
  0xe1   : > { %2769 = vmatpush.bf16.msra.mxu1 %v3687_v21  ;;  %2738 = vmatmul.bf16.vlgmr.msrb.gmra.mxu2 %v5558_v35  ;;  %v3974_v21 = vld [vmem:[%s7060_s9 + $0x520] sm:$0xf]  ;;  %v3783_v26 = vor.u32 %v4590_v17, %v3782_v15  ;;  %v4263_v15 = vor.u32 %v4710_v5, %v4262_v4  ;;  %v4563_v17 = vld [vmem:[%s7060_s9 + $0x2e4] sm:$0xf]  ;;  %v3400_v13 = vld [vmem:[%s7060_s9 + $0xb8] sm:$0xf0] }
  0xe2   : > { %2782 = vmatpush.bf16.msra.mxu2 %v3879_v22  ;;  %2751 = vmatmul.bf16.vlgmr.msrb.gmra.mxu3 %v5569_v40  ;;  %v4638_v22 = vld [vmem:[%s7060_s9 + $0x534] sm:$0xf0]  ;;  %v4166_v5 = vld [vmem:[%s7060_s9 + $0x6a0] sm:$0xf] }
  0xe3   : > { %2795 = vmatpush.bf16.msra.mxu3 %v4071_v34  ;;  %v3975_v33 = vor.u32 %v4638_v22, %v3974_v21  ;;  %v3758_v34 = vld [vmem:[%s7060_s9 + $0x370] sm:$0xf]  ;;  %v3711_v22 = vor.u32 %v4572_v3, %v3710_v1  ;;  %v3616_v3 = vld [vmem:[%s7060_s9 + $0x268] sm:$0xf0] }
  0xe4   : > { %2757 = vmatpush.bf16.msra.mxu0 %v3471_v38  ;;  %v3950_v38 = vld [vmem:[%s7060_s9 + $0x4f0] sm:$0xf]  ;;  %v2531_v44 = vpop.f32.mrf.mxu2  ;;  %v3759_v46 = vor.u32 %v4584_v36, %v3758_v34  ;;  %v4509_v36 = vld [vmem:[%s7060_s9 + $0x134] sm:$0xf] }
  0xe5   : > { %2770 = vmatpush.bf16.msra.mxu1 %v3663_v42  ;;  %v3350_v42 = vld [vmem:[%s7060_s9 + $0x40] sm:$0xf]  ;;  %v2532_v49 = vadd.f32 %v2531_v44, %v993_v29  ;;  %v2520_v50 = vpop.f32.mrf.mxu1  ;;  %v3951_v51 = vor.u32 %v4632_v39, %v3950_v38  ;;  %v4752_v29 = vld [vmem:[%s7060_s9 + $0x8c4] sm:$0xf0]  ;;  %v4239_v38 = vor.u32 %v4704_v25, %v4238_v24  ;;  %v4557_v39 = vld [vmem:[%s7060_s9 + $0x2b4] sm:$0xf]  ;;  %v3403_v24 = vor.u32 %v4491_v12, %v3400_v13 }
  0xe6   : > { %2783 = vmatpush.bf16.msra.mxu2 %v3855_v45  ;;  %v2507_v45 = vpop.f32.mrf.mxu0  ;;  %v3351_v56 = vor.u32 %v4482_v43, %v3350_v42  ;;  %v4431_v42 = vor.u32 %v4752_v29, %v4430_v28  ;;  %v4214_v43 = vld [vmem:[%s7060_s9 + $0x700] sm:$0xf]  ;;  %v4698_v44 = vld [vmem:[%s7060_s9 + $0x714] sm:$0xf0]  ;;  %v3448_v50 = vld [vmem:[%s7060_s9 + $0x118] sm:$0xf0] }
  0xe7   : > { %2796 = vmatpush.bf16.msra.mxu3 %v4047_v48  ;;  %v4530_v48 = vld [vmem:[%s7060_s9 + $0x1d4] sm:$0xf0]  ;;  %v4485_v29 = vld [vmem:[%s7060_s9 + $0x74] sm:$0xf]  ;;  %v3520_v12 = vld [vmem:[%s7060_s9 + $0x1a8] sm:$0xf0] }
  0xe8   : > { %2758 = vmatpush.bf16.msra.mxu0 %v3447_v52  ;;  %v3734_v52 = vld [vmem:[%s7060_s9 + $0x340] sm:$0xf]  ;;  %v3543_v61 = vor.u32 %v4530_v48, %v3542_v47  ;;  %v4746_v47 = vld [vmem:[%s7060_s9 + $0x894] sm:$0xf0] }
  0xe9   : > { %2771 = vmatpush.bf16.msra.mxu1 %v3639_v55  ;;  %v2544_v55 = vpop.f32.mrf.mxu3 }
  0xea   : > { %2784 = vmatpush.bf16.msra.mxu2 %v3831_v59  ;;  %v4476_v59 = vld [vmem:[%s7060_s9 + $0x24] sm:$0xf0]  ;;  %v6500_v60 = vadd.f32 %v2544_v55, %v2532_v49  ;;  %v4503_v49 = vld [vmem:[%s7060_s9 + $0x104] sm:$0xf]  ;;  %v4190_v55 = vld [vmem:[%s7060_s9 + $0x6d0] sm:$0xf] }
  0xeb   : > { %2797 = vmatpush.bf16.msra.mxu3 %v4023_v62  ;;  %v3518_v62 = vld [vmem:[%s7060_s9 + $0x190] sm:$0xf] }
  0xec   : > { %2759 = vmatpush.bf16.msra.mxu0 %v3423_v2  ;;  %v3735_v2 = vor.u32 %v4578_v53, %v3734_v52  ;;  %v2533_v21 = vpop.f32.mrf.mxu2  ;;  %v4551_v52 = vld [vmem:[%s7060_s9 + $0x284] sm:$0xf]  ;;  %v3640_v53 = vld [vmem:[%s7060_s9 + $0x298] sm:$0xf0] }
  0xed   : > { %2772 = vmatpush.bf16.msra.mxu1 %v3615_v6  ;;  %v3927_v6 = vor.u32 %v4626_v57, %v3926_v54  ;;  %v3451_v57 = vor.u32 %v4503_v49, %v3448_v50  ;;  %v3592_v21 = vld [vmem:[%s7060_s9 + $0x238] sm:$0xf0]  ;;  %v4479_v49 = vld [vmem:[%s7060_s9 + $0x44] sm:$0xf] }
  0xee   : > { %2785 = vmatpush.bf16.msra.mxu2 %v3807_v10  ;;  %v3327_v10 = vor.u32 %v4476_v59, %v3326_v58  ;;  %v4382_v58 = vld [vmem:[%s7060_s9 + $0x850] sm:$0xf]  ;;  %v4740_v59 = vld [vmem:[%s7060_s9 + $0x864] sm:$0xf0]  ;;  %v3352_v50 = vld [vmem:[%s7060_s9 + $0x58] sm:$0xf0] }
  0xef   : > { %2798 = vmatpush.bf16.msra.mxu3 %v3999_v14  ;;  %v3519_v14 = vor.u32 %v4524_v63, %v3518_v62  ;;  %v4497_v62 = vld [vmem:[%s7060_s9 + $0xd4] sm:$0xf]  ;;  %v3424_v63 = vld [vmem:[%s7060_s9 + $0xe8] sm:$0xf0]  ;;  %v4383_v4 = vor.u32 %v4740_v59, %v4382_v58 }
  0xf0   : > { %2760 = vmatpush.bf16.msra.mxu0 %v3399_v20  ;;  %v3688_v20 = vld [vmem:[%s7060_s9 + $0x2f8] sm:$0xf0] }
  0xf1   : > { %2773 = vmatpush.bf16.msra.mxu1 %v3591_v23  ;;  %v4455_v23 = vor.u32 %v4758_v8, %v4454_v7  ;;  %v3691_v34 = vor.u32 %v4563_v17, %v3688_v20  ;;  %v3427_v7 = vor.u32 %v4497_v62, %v3424_v63  ;;  %v4358_v8 = vld [vmem:[%s7060_s9 + $0x820] sm:$0xf]  ;;  %v4539_v20 = vld [vmem:[%s7060_s9 + $0x224] sm:$0xf]  ;;  %v4716_v62 = vld [vmem:[%s7060_s9 + $0x7a4] sm:$0xf0] }
  0xf2   : > { %2786 = vmatpush.bf16.msra.mxu2 %v3783_v26  ;;  %v3499_v26 = vor.u32 %v4515_v9, %v3496_v11  ;;  %v4734_v9 = vld [vmem:[%s7060_s9 + $0x834] sm:$0xf0]  ;;  %v3595_v28 = vor.u32 %v4539_v20, %v3592_v21  ;;  %v4473_v63 = vld [vmem:[%s7060_s9 + $0x14] sm:$0xf]  ;;  %v4456_v21 = vld [vmem:[%s7060_s9 + $0x8f8] sm:$0xf0] }
  0xf3   : > { %2799 = vmatpush.bf16.msra.mxu3 %v3975_v33  ;;  %v2546_v33 = vpop.f32.mrf.mxu3 }
  0xf4   : > { %2761 = vmatpush.bf16.msra.mxu0 %v3375_v37  ;;  %v3472_v37 = vld [vmem:[%s7060_s9 + $0x148] sm:$0xf0] }
  0xf5   : > { %2774 = vmatpush.bf16.msra.mxu1 %v3567_v41  ;;  %v3664_v41 = vld [vmem:[%s7060_s9 + $0x2c8] sm:$0xf0]  ;;  %v3475_v45 = vor.u32 %v4509_v36, %v3472_v37  ;;  %v4533_v37 = vld [vmem:[%s7060_s9 + $0x1f4] sm:$0xf] }
  0xf6   : > { %2787 = vmatpush.bf16.msra.mxu2 %v3759_v46  ;;  %v4406_v46 = vld [vmem:[%s7060_s9 + $0x880] sm:$0xf]  ;;  %v3667_v48 = vor.u32 %v4557_v39, %v3664_v41  ;;  %v3376_v33 = vld [vmem:[%s7060_s9 + $0x88] sm:$0xf0] }
  0xf7   : > { %2800 = vmatpush.bf16.msra.mxu3 %v3951_v51  ;;  %v4215_v51 = vor.u32 %v4698_v44, %v4214_v43  ;;  %v4407_v54 = vor.u32 %v4746_v47, %v4406_v46  ;;  %v4674_v43 = vld [vmem:[%s7060_s9 + $0x654] sm:$0xf0]  ;;  %v3379_v44 = vor.u32 %v4485_v29, %v3376_v33  ;;  %v4701_v29 = vld [vmem:[%s7060_s9 + $0x734] sm:$0xf]  ;;  %v4240_v33 = vld [vmem:[%s7060_s9 + $0x748] sm:$0xf0] }
  0xf8   : > { %2762 = vmatpush.bf16.msra.mxu0 %v3351_v56  ;;  %v4692_v56 = vld [vmem:[%s7060_s9 + $0x6e4] sm:$0xf0]  ;;  %v4722_v46 = vld [vmem:[%s7060_s9 + $0x7d4] sm:$0xf0] }
  0xf9   : > { %2775 = vmatpush.bf16.msra.mxu1 %v3543_v61  ;;  %v3643_v61 = vor.u32 %v4551_v52, %v3640_v53  ;;  %v4191_v1 = vor.u32 %v4692_v56, %v4190_v55  ;;  %v3544_v55 = vld [vmem:[%s7060_s9 + $0x1d8] sm:$0xf0]  ;;  %v4094_v56 = vld [vmem:[%s7060_s9 + $0x610] sm:$0xf] }
  0xfa   : > { %2788 = vmatpush.bf16.msra.mxu2 %v3735_v2  ;;  %v4545_v2 = vld [vmem:[%s7060_s9 + $0x254] sm:$0xf] }
  0xfb   : > { %2801 = vmatpush.bf16.msra.mxu3 %v3927_v6  ;;  %v4686_v6 = vld [vmem:[%s7060_s9 + $0x6b4] sm:$0xf0] }
  0xfc   : > { %2763 = vmatpush.bf16.msra.mxu0 %v3327_v10  ;;  %v3619_v10 = vor.u32 %v4545_v2, %v3616_v3  ;;  %v2557_v11 = vpop.f32.mrf.mxu0  ;;  %v4167_v17 = vor.u32 %v4686_v6, %v4166_v5  ;;  %v3328_v2 = vld [vmem:[%s7060_s9 + $0x28] sm:$0xf0]  ;;  %v4611_v3 = vld [vmem:[%s7060_s9 + $0x464] sm:$0xf] }
  0xfd   : > { %2776 = vmatpush.bf16.msra.mxu1 %v3519_v14  ;;  %v2570_v14 = vpop.f32.mrf.mxu1  ;;  %v4707_v6 = vld [vmem:[%s7060_s9 + $0x764] sm:$0xf]  ;;  %v3331_v20 = vor.u32 %v4473_v63, %v3328_v2 }
  0xfe   : > { %2789 = vmatpush.bf16.msra.mxu2 %v3711_v22  ;;  %v4359_v22 = vor.u32 %v4734_v9, %v4358_v8  ;;  %v4072_v8 = vld [vmem:[%s7060_s9 + $0x5f8] sm:$0xf0] }
  0xff   : > { %2802 = vmatpush.bf16.msra.mxu3 %v3903_v27  ;;  %2764 = vmatmul.bf16.vlgmr.msra.gmra.mxu0 %v5399_v16  ;;  %v4728_v27 = vld [vmem:[%s7060_s9 + $0x804] sm:$0xf0] }
 0x100   : > { %2808 = vmatpush.bf16.msrb.mxu0 %v4263_v15  ;;  %2777 = vmatmul.bf16.vlgmr.msra.gmra.mxu1 %v5424_v30  ;;  %v2558_v15 = vadd.f32 %v2557_v11, %v6500_v60  ;;  %v4680_v60 = vld [vmem:[%s7060_s9 + $0x684] sm:$0xf0]  ;;  %v4521_v11 = vld [vmem:[%s7060_s9 + $0x194] sm:$0xf] }
 0x101   : > { %2821 = vmatpush.bf16.msrb.mxu1 %v4455_v23  ;;  %2790 = vmatmul.bf16.vlgmr.msra.gmra.mxu2 %v5426_v31  ;;  %v4142_v23 = vld [vmem:[%s7060_s9 + $0x670] sm:$0xf] }
 0x102   : > { %2834 = vmatpush.bf16.msrb.mxu2 %v3499_v26  ;;  %2803 = vmatmul.bf16.vlgmr.msra.gmra.mxu3 %v5428_v32  ;;  %v2571_v25 = vadd.f32 %v2570_v14, %v2558_v15  ;;  %v4334_v26 = vld [vmem:[%s7060_s9 + $0x7f0] sm:$0xf]  ;;  %v4143_v36 = vor.u32 %v4680_v60, %v4142_v23  ;;  %v4605_v23 = vld [vmem:[%s7060_s9 + $0x434] sm:$0xf]  ;;  %v3856_v60 = vld [vmem:[%s7060_s9 + $0x448] sm:$0xf0] }
 0x103   : > { %2847 = vmatpush.bf16.msrb.mxu3 %v3691_v34  ;;  %v4335_v41 = vor.u32 %v4728_v27, %v4334_v26  ;;  %v4653_v26 = vld [vmem:[%s7060_s9 + $0x5b4] sm:$0xf]  ;;  %v4048_v27 = vld [vmem:[%s7060_s9 + $0x5c8] sm:$0xf0] }
 0x104   : > { %2809 = vmatpush.bf16.msrb.mxu0 %v4239_v38  ;;  %v2583_v34 = vpop.f32.mrf.mxu2  ;;  %v3568_v38 = vld [vmem:[%s7060_s9 + $0x208] sm:$0xf0]  ;;  %v2559_v52 = vpop.f32.mrf.mxu0 }
 0x105   : > { %2822 = vmatpush.bf16.msrb.mxu1 %v4431_v42  ;;  %v2584_v39 = vadd.f32 %v2583_v34, %v2571_v25  ;;  %v4118_v42 = vld [vmem:[%s7060_s9 + $0x640] sm:$0xf]  ;;  %v2596_v47 = vpop.f32.mrf.mxu3  ;;  %v2572_v58 = vpop.f32.mrf.mxu1  ;;  %v3523_v25 = vor.u32 %v4521_v11, %v3520_v12 }
 0x106   : > { %2835 = vmatpush.bf16.msrb.mxu2 %v3475_v45  ;;  %v4310_v45 = vld [vmem:[%s7060_s9 + $0x7c0] sm:$0xf]  ;;  %v4000_v58 = vld [vmem:[%s7060_s9 + $0x568] sm:$0xf0] }
 0x107   : > { %2848 = vmatpush.bf16.msrb.mxu3 %v3667_v48  ;;  %v3571_v48 = vor.u32 %v4533_v37, %v3568_v38  ;;  %v6694_v53 = vadd.f32 %v2596_v47, %v2584_v39  ;;  %v4311_v59 = vor.u32 %v4722_v46, %v4310_v45  ;;  %v4749_v37 = vld [vmem:[%s7060_s9 + $0x8b4] sm:$0xf]  ;;  %v4432_v38 = vld [vmem:[%s7060_s9 + $0x8c8] sm:$0xf0]  ;;  %v4051_v39 = vor.u32 %v4653_v26, %v4048_v27  ;;  %v4024_v45 = vld [vmem:[%s7060_s9 + $0x598] sm:$0xf0] }
 0x108   : > { %2810 = vmatpush.bf16.msrb.mxu0 %v4215_v51  ;;  %v4527_v51 = vld [vmem:[%s7060_s9 + $0x1c4] sm:$0xf]  ;;  %v4216_v47 = vld [vmem:[%s7060_s9 + $0x718] sm:$0xf0]  ;;  %v4144_v26 = vld [vmem:[%s7060_s9 + $0x688] sm:$0xf0] }
 0x109   : > { %2823 = vmatpush.bf16.msrb.mxu1 %v4407_v54  ;;  %v4119_v54 = vor.u32 %v4674_v43, %v4118_v42  ;;  %v3547_v5 = vor.u32 %v4527_v51, %v3544_v55  ;;  %v3832_v42 = vld [vmem:[%s7060_s9 + $0x418] sm:$0xf0]  ;;  %v4243_v43 = vor.u32 %v4701_v29, %v4240_v33  ;;  %v4695_v46 = vld [vmem:[%s7060_s9 + $0x704] sm:$0xf]  ;;  %v3808_v55 = vld [vmem:[%s7060_s9 + $0x3e8] sm:$0xf0] }
 0x10a   : > { %2836 = vmatpush.bf16.msrb.mxu2 %v3451_v57  ;;  %v4668_v57 = vld [vmem:[%s7060_s9 + $0x624] sm:$0xf0]  ;;  %v4408_v51 = vld [vmem:[%s7060_s9 + $0x898] sm:$0xf0]  ;;  %v4725_v29 = vld [vmem:[%s7060_s9 + $0x7f4] sm:$0xf] }
 0x10b   : > { %2849 = vmatpush.bf16.msrb.mxu3 %v3643_v61  ;;  %v4286_v61 = vld [vmem:[%s7060_s9 + $0x790] sm:$0xf]  ;;  %v4095_v9 = vor.u32 %v4668_v57, %v4094_v56  ;;  %v4219_v56 = vor.u32 %v4695_v46, %v4216_v47  ;;  %v4641_v57 = vld [vmem:[%s7060_s9 + $0x554] sm:$0xf]  ;;  %v4336_v33 = vld [vmem:[%s7060_s9 + $0x808] sm:$0xf0] }
 0x10c   : > { %2811 = vmatpush.bf16.msrb.mxu0 %v4191_v1  ;;  %v3355_v1 = vor.u32 %v4479_v49, %v3352_v50  ;;  %v2585_v13 = vpop.f32.mrf.mxu2  ;;  %v4287_v14 = vor.u32 %v4716_v62, %v4286_v61  ;;  %v4743_v50 = vld [vmem:[%s7060_s9 + $0x884] sm:$0xf]  ;;  %v994_v61 = vperm.slane %v6238_v18, 2  ;;  %v4003_v2 = vor.u32 %v4641_v57, %v4000_v58  ;;  %v3784_v18 = vld [vmem:[%s7060_s9 + $0x3b8] sm:$0xf0] }
 0x10d   : > { %2824 = vmatpush.bf16.msrb.mxu1 %v4383_v4  ;;  %v3880_v4 = vld [vmem:[%s7060_s9 + $0x478] sm:$0xf0]  ;;  %v4411_v62 = vor.u32 %v4743_v50, %v4408_v51  ;;  %v4719_v51 = vld [vmem:[%s7060_s9 + $0x7c4] sm:$0xf] }
 0x10e   : > { %2837 = vmatpush.bf16.msrb.mxu2 %v3427_v7  ;;  %v4659_v7 = vld [vmem:[%s7060_s9 + $0x5e4] sm:$0xf]  ;;  %v3883_v15 = vor.u32 %v4611_v3, %v3880_v4 }
 0x10f   : > { %2850 = vmatpush.bf16.msrb.mxu3 %v3619_v10  ;;  %v4264_v10 = vld [vmem:[%s7060_s9 + $0x778] sm:$0xf0]  ;;  %v4587_v3 = vld [vmem:[%s7060_s9 + $0x3a4] sm:$0xf] }
 0x110   : > { %2812 = vmatpush.bf16.msrb.mxu0 %v4167_v17  ;;  %v4755_v17 = vld [vmem:[%s7060_s9 + $0x8e4] sm:$0xf]  ;;  %v3787_v13 = vor.u32 %v4587_v3, %v3784_v18 }
 0x111   : > { %2825 = vmatpush.bf16.msrb.mxu1 %v4359_v22  ;;  %v4075_v22 = vor.u32 %v4659_v7, %v4072_v8  ;;  %v4459_v34 = vor.u32 %v4755_v17, %v4456_v21  ;;  %v4683_v8 = vld [vmem:[%s7060_s9 + $0x6a4] sm:$0xf]  ;;  %v3760_v21 = vld [vmem:[%s7060_s9 + $0x388] sm:$0xf0] }
 0x112   : > { %2838 = vmatpush.bf16.msrb.mxu2 %v3403_v24  ;;  %v4267_v24 = vor.u32 %v4707_v6, %v4264_v10  ;;  %v3976_v6 = vld [vmem:[%s7060_s9 + $0x538] sm:$0xf0] }
 0x113   : > { %2851 = vmatpush.bf16.msrb.mxu3 %v3595_v28  ;;  %v2598_v28 = vpop.f32.mrf.mxu3 }
 0x114   : > { %2813 = vmatpush.bf16.msrb.mxu0 %v4143_v36  ;;  %v3859_v36 = vor.u32 %v4605_v23, %v3856_v60  ;;  %v4629_v60 = vld [vmem:[%s7060_s9 + $0x4f4] sm:$0xf] }
 0x115   : > { %2826 = vmatpush.bf16.msrb.mxu1 %v4335_v41  ;;  %v4599_v41 = vld [vmem:[%s7060_s9 + $0x404] sm:$0xf] }
 0x116   : > { %2839 = vmatpush.bf16.msrb.mxu2 %v3379_v44  ;;  %v4647_v44 = vld [vmem:[%s7060_s9 + $0x584] sm:$0xf]  ;;  %v3835_v49 = vor.u32 %v4599_v41, %v3832_v42  ;;  %v3928_v41 = vld [vmem:[%s7060_s9 + $0x4d8] sm:$0xf0] }
 0x117   : > { %2852 = vmatpush.bf16.msrb.mxu3 %v3571_v48  ;;  %v4435_v48 = vor.u32 %v4749_v37, %v4432_v38  ;;  %v4027_v52 = vor.u32 %v4647_v44, %v4024_v45  ;;  %v3736_v37 = vld [vmem:[%s7060_s9 + $0x358] sm:$0xf0]  ;;  %v4671_v44 = vld [vmem:[%s7060_s9 + $0x644] sm:$0xf] }
 0x118   : > { %2814 = vmatpush.bf16.msrb.mxu0 %v4119_v54  ;;  %v4593_v54 = vld [vmem:[%s7060_s9 + $0x3d4] sm:$0xf]  ;;  %v4120_v45 = vld [vmem:[%s7060_s9 + $0x658] sm:$0xf0] }
 0x119   : > { %2827 = vmatpush.bf16.msrb.mxu1 %v4311_v59  ;;  %v4689_v59 = vld [vmem:[%s7060_s9 + $0x6d4] sm:$0xf]  ;;  %v3811_v63 = vor.u32 %v4593_v54, %v3808_v55  ;;  %v4312_v54 = vld [vmem:[%s7060_s9 + $0x7d8] sm:$0xf0]  ;;  %v4123_v58 = vor.u32 %v4671_v44, %v4120_v45 }
 0x11a   : > { %2840 = vmatpush.bf16.msrb.mxu2 %v3355_v1  ;;  %v4737_v1 = vld [vmem:[%s7060_s9 + $0x854] sm:$0xf] }
 0x11b   : > { %2853 = vmatpush.bf16.msrb.mxu3 %v3547_v5  ;;  %v4635_v5 = vld [vmem:[%s7060_s9 + $0x524] sm:$0xf] }
 0x11c   : > { %2815 = vmatpush.bf16.msrb.mxu0 %v4095_v9  ;;  %v2609_v7 = vpop.f32.mrf.mxu0  ;;  %v4168_v9 = vld [vmem:[%s7060_s9 + $0x6b8] sm:$0xf0]  ;;  %v3979_v17 = vor.u32 %v4635_v5, %v3976_v6 }
 0x11d   : > { %2828 = vmatpush.bf16.msrb.mxu1 %v4287_v14  ;;  %v2610_v10 = vadd.f32 %v2609_v7, %v994_v61  ;;  %v2622_v11 = vpop.f32.mrf.mxu1  ;;  %v4731_v14 = vld [vmem:[%s7060_s9 + $0x824] sm:$0xf]  ;;  %v4171_v23 = vor.u32 %v4683_v8, %v4168_v9  ;;  %v4665_v61 = vld [vmem:[%s7060_s9 + $0x614] sm:$0xf] }
 0x11e   : > { %2841 = vmatpush.bf16.msrb.mxu2 %v3331_v20  ;;  %v4581_v20 = vld [vmem:[%s7060_s9 + $0x374] sm:$0xf] }
 0x11f   : > { %2854 = vmatpush.bf16.msrb.mxu3 %v3523_v25  ;;  %2816 = vmatmul.bf16.vlgmr.msrb.gmra.mxu0 %v5558_v35  ;;  %v4677_v25 = vld [vmem:[%s7060_s9 + $0x674] sm:$0xf]  ;;  %v3763_v28 = vor.u32 %v4581_v20, %v3760_v21 }
 0x120   : > { %2860 = vmatpush.bf16.msra.mxu0 %v3883_v15  ;;  %2829 = vmatmul.bf16.vlgmr.msrb.gmra.mxu1 %v5569_v40  ;;  %v4360_v15 = vld [vmem:[%s7060_s9 + $0x838] sm:$0xf0]  ;;  %v4147_v38 = vor.u32 %v4677_v25, %v4144_v26 }
 0x121   : > { %2873 = vmatpush.bf16.msra.mxu1 %v4075_v22  ;;  %2842 = vmatmul.bf16.vlgmr.msrb.gmra.mxu2 %v5399_v16  ;;  %v4192_v16 = vld [vmem:[%s7060_s9 + $0x6e8] sm:$0xf0]  ;;  %v2623_v22 = vadd.f32 %v2622_v11, %v2610_v10  ;;  %v4363_v27 = vor.u32 %v4731_v14, %v4360_v15 }
 0x122   : > { %2886 = vmatpush.bf16.msra.mxu2 %v4267_v24  ;;  %2855 = vmatmul.bf16.vlgmr.msrb.gmra.mxu3 %v5424_v30  ;;  %v4384_v30 = vld [vmem:[%s7060_s9 + $0x868] sm:$0xf0]  ;;  %v4195_v4 = vor.u32 %v4689_v59, %v4192_v16  ;;  %v4617_v59 = vld [vmem:[%s7060_s9 + $0x494] sm:$0xf] }
 0x123   : > { %2899 = vmatpush.bf16.msra.mxu3 %v4459_v34  ;;  %v4387_v12 = vor.u32 %v4737_v1, %v4384_v30  ;;  %v3952_v24 = vld [vmem:[%s7060_s9 + $0x508] sm:$0xf0]  ;;  %v4713_v30 = vld [vmem:[%s7060_s9 + $0x794] sm:$0xf] }
 0x124   : > { %2861 = vmatpush.bf16.msra.mxu0 %v3859_v36  ;;  %v3955_v34 = vor.u32 %v4629_v60, %v3952_v24  ;;  %v4575_v36 = vld [vmem:[%s7060_s9 + $0x344] sm:$0xf]  ;;  %v2611_v42 = vpop.f32.mrf.mxu0  ;;  %v3904_v16 = vld [vmem:[%s7060_s9 + $0x4a8] sm:$0xf0] }
 0x125   : > { %2874 = vmatpush.bf16.msra.mxu1 %v4051_v39  ;;  %v4623_v39 = vld [vmem:[%s7060_s9 + $0x4c4] sm:$0xf]  ;;  %v2624_v46 = vpop.f32.mrf.mxu1  ;;  %v3739_v50 = vor.u32 %v4575_v36, %v3736_v37  ;;  %v3907_v3 = vor.u32 %v4617_v59, %v3904_v16 }
 0x126   : > { %2887 = vmatpush.bf16.msra.mxu2 %v4243_v43  ;;  %v2635_v43 = vpop.f32.mrf.mxu2  ;;  %v3931_v55 = vor.u32 %v4623_v39, %v3928_v41 }
 0x127   : > { %2900 = vmatpush.bf16.msra.mxu3 %v4435_v48  ;;  %v2636_v47 = vadd.f32 %v2635_v43, %v2623_v22  ;;  %v4460_v48 = vmul.f32 -1.442695, %v6437_v19  ;;  %v3712_v19 = vld [vmem:[%s7060_s9 + $0x328] sm:$0xf0] }
 0x128   : > { %2862 = vmatpush.bf16.msra.mxu0 %v3835_v49  ;;  %v4339_v49 = vor.u32 %v4725_v29, %v4336_v33 }
 0x129   : > { %2875 = vmatpush.bf16.msra.mxu1 %v4027_v52  ;;  %v2648_v52 = vpop.f32.mrf.mxu3  ;;  %4823 = vpow2.f32 %v4460_v48 }
 0x12a   : > { %2888 = vmatpush.bf16.msra.mxu2 %v4219_v56  ;;  %v4569_v56 = vld [vmem:[%s7060_s9 + $0x314] sm:$0xf]  ;;  %v2649_v57 = vadd.f32 %v2648_v52, %v2636_v47 }
 0x12b   : > { %2901 = vmatpush.bf16.msra.mxu3 %v4411_v62  ;;  %v4096_v62 = vld [vmem:[%s7060_s9 + $0x628] sm:$0xf0]  ;;  %v3715_v1 = vor.u32 %v4569_v56, %v3712_v19 }
 0x12c   : > { %2863 = vmatpush.bf16.msra.mxu0 %v3811_v63  ;;  %v4315_v63 = vor.u32 %v4719_v51, %v4312_v54  ;;  %v4099_v18 = vor.u32 %v4665_v61, %v4096_v62 }
 0x12d   : > { %2876 = vmatpush.bf16.msra.mxu1 %v4003_v2  ;;  %v4288_v2 = vld [vmem:[%s7060_s9 + $0x7a8] sm:$0xf0] }
 0x12e   : > { %2889 = vmatpush.bf16.msra.mxu2 %v4195_v4  ;;  %v2637_v4 = vpop.f32.mrf.mxu2  ;;  %v4291_v5 = vor.u32 %v4713_v30, %v4288_v2 }
 0x12f   : > { %2902 = vmatpush.bf16.msra.mxu3 %v4387_v12  ;;  %v4824_v7 = vpop.eup %4823 }
 0x130   : > { %2864 = vmatpush.bf16.msra.mxu0 %v3787_v13  ;;  %v2915_v8 = vadd.f32 1.0, %v4824_v7 }
 0x131   : > { %2877 = vmatpush.bf16.msra.mxu1 %v3979_v17  ;;  %v2650_v6 = vpop.f32.mrf.mxu3 }
 0x132   : > { %2890 = vmatpush.bf16.msra.mxu2 %v4171_v23  ;;  %4825 = vrcp.f32 %v2915_v8  ;;  %vm2921_vm2 = vweird.f32 %v2915_v8  ;;  %v2927_v29 = vand.u32 2147483648, %v2915_v8  ;;  %v2925_v33 = vand.u32 2147483647, %v2915_v8 }
 0x133   : > { %2903 = vmatpush.bf16.msra.mxu3 %v4363_v27 }
 0x134   : > { %2865 = vmatpush.bf16.msra.mxu0 %v3763_v28  ;;  %vm2926_vm5 = vcmp.eq.f32.partialorder %v2925_v33, 8.507059e+37 }
 0x135   : > { %2878 = vmatpush.bf16.msra.mxu1 %v3955_v34 }
 0x136   : > { %2891 = vmatpush.bf16.msra.mxu2 %v4147_v38  ;;  %v2928_v38 = vor.u32 1.1754944e-38, %v2927_v29 }
 0x137   : > { %2904 = vmatpush.bf16.msra.mxu3 %v4339_v49 }
 0x138   : > { %2866 = vmatpush.bf16.msra.mxu0 %v3739_v50  ;;  %v4826_v13 = vpop.eup %4825 }
 0x139   : > { %2879 = vmatpush.bf16.msra.mxu1 %v3931_v55  ;;  %v2917_v14 = vmul.f32 %v4826_v13, %v2915_v8  ;;  %vm2922_vm3 = vweird.f32 %v4826_v13 }
 0x13a   : > { %2892 = vmatpush.bf16.msra.mxu2 %v4123_v58  ;;  %vm2923_vm4 = vmor %vm2921_vm2, %vm2922_vm3 }
 0x13b   : > { %2905 = vmatpush.bf16.msra.mxu3 %v4315_v63  ;;  %v2918_v23 = vsub.f32 1.0, %v2917_v14 }
 0x13c   : > { %2867 = vmatpush.bf16.msra.mxu0 %v3715_v1  ;;  %v2661_v9 = vpop.f32.mrf.mxu0 }
 0x13d   : > { %2880 = vmatpush.bf16.msra.mxu1 %v3907_v3  ;;  %v2662_v10 = vadd.f32 %v2661_v9, %v2649_v57  ;;  %v2674_v11 = vpop.f32.mrf.mxu1  ;;  %v2919_v25 = vmul.f32 %v4826_v13, %v2918_v23 }
 0x13e   : > { %2893 = vmatpush.bf16.msra.mxu2 %v4099_v18 }
 0x13f   : > { %2868 = vmatmul.bf16.vlgmr.msra.gmra.mxu0 %v5426_v31  ;;  %2906 = vmatpush.bf16.msra.mxu3 %v4291_v5  ;;  %v2675_v12 = vadd.f32 %v2674_v11, %v2662_v10  ;;  %v6932_v31 = vld [vmem:[%s7061_s10] sm:$0x3f]  ;;  %v2920_v28 = vadd.f32 %v4826_v13, %v2919_v25 }
 0x140   : > { %2881 = vmatmul.bf16.vlgmr.msra.gmra.mxu1 %v5428_v32  ;;  %v995_v32 = vperm.slane %v6932_v31, 3 }
 0x141   : > { %2894 = vmatmul.bf16.vlgmr.msra.gmra.mxu2 %v5558_v35  ;;  %v4462_v35 = vmul.f32 -1.442695, %v2675_v12  ;;  %v2924_v37 = vsel %vm2923_vm4, %v4826_v13, %v2920_v28 }
 0x142   : > { %2907 = vmatmul.bf16.vlgmr.msra.gmra.mxu3 %v5569_v40  ;;  %v2929_v42 = vsel %vm2926_vm5, %v2928_v38, %v2924_v37 }
 0x143   : > { %4827 = vpow2.f32 %v4462_v35  ;;  %v3008_v49 = vmul.f32 1.442695, %v2929_v42 }
 0x144   : > { %v2687_v40 = vpop.f32.mrf.mxu2  ;;  %v2663_v17 = vpop.f32.mrf.mxu0 }
 0x145   : > { %v2688_v15 = vadd.f32 %v2687_v40, %v995_v32  ;;  %v2700_v20 = vpop.f32.mrf.mxu3  ;;  %v2676_v21 = vpop.f32.mrf.mxu1 }
 0x146   : > { %v6942_v21 = vld [vmem:[%s634_s20] sm:$0xff]  ;;  %s3063_s20 = scalar_lea.hbm %s7062_s11, %s4467_s29 }
 0x147   : > { %v2701_v22 = vadd.f32 %v2700_v20, %v2688_v15  ;;  %v686_v23 = vrot.slane %v6942_v21, 7 }
 0x149   : > { %v4828_v60 = vpop.eup %4827 }
 0x14a   : > { %v2953_v24 = vadd.f32 1.0, %v4828_v60  ;;  %v4821_v60 = vld [vmem:[%s652_s1] ss:$0 sm:$0xff] }
 0x14c   : > { %v2689_v26 = vpop.f32.mrf.mxu2  ;;  %4829 = vrcp.f32 %v2953_v24  ;;  %v2965_v41 = vand.u32 2147483648, %v2953_v24  ;;  %vm2959_vm6 = vweird.f32 %v2953_v24  ;;  %v2963_v44 = vand.u32 2147483647, %v2953_v24 }
 0x14d   : > { %v2702_v27 = vpop.f32.mrf.mxu3  ;;  %4831 = vpow2.f32 %v3008_v49  ;;  %v690_v26 = vsel %vm670_vm0, %v4821_v60, %v686_v23 }
 0x14e   : > { %v2966_v47 = vor.u32 1.1754944e-38, %v2965_v41  ;;  %vm2964_vm9 = vcmp.eq.f32.partialorder %v2963_v44, 8.507059e+37 }
 0x152   : > { %v4830_v34 = vpop.eup %4829 }
 0x153   : > { %v2955_v36 = vmul.f32 %v4830_v34, %v2953_v24  ;;  %vm2960_vm7 = vweird.f32 %v4830_v34  ;;  %v6935_v61 = vpop.eup %4831 }
 0x154   : > { %vm2961_vm8 = vmor %vm2959_vm6, %vm2960_vm7 }
 0x155   : > { %v2956_v39 = vsub.f32 1.0, %v2955_v36 }
 0x157   : > { %v2957_v43 = vmul.f32 %v4830_v34, %v2956_v39 }
 0x159   : > { %v2958_v45 = vadd.f32 %v4830_v34, %v2957_v43 }
 0x15b   : > { %v2962_v50 = vsel %vm2961_vm8, %v4830_v34, %v2958_v45 }
 0x15c   : > { %v2713_v46 = vpop.f32.mrf.mxu0  ;;  %v2967_v52 = vsel %vm2964_vm9, %v2966_v47, %v2962_v50 }
 0x15d   : > { %v2714_v48 = vadd.f32 %v2713_v46, %v2701_v22  ;;  %v2726_v51 = vpop.f32.mrf.mxu1  ;;  %v3010_v54 = vmul.f32 1.442695, %v2967_v52  ;;  %v996_v22 = vperm.slane %v6932_v31, 4  ;;  %v997_v52 = vperm.slane %v6932_v31, 5 }
 0x15f   : > { %v2727_v55 = vadd.f32 %v2726_v51, %v2714_v48  ;;  %4833 = vpow2.f32 %v3010_v54 }
 0x164   : > { %v2739_v56 = vpop.f32.mrf.mxu2  ;;  %v2715_v57 = vpop.f32.mrf.mxu0 }
 0x165   : > { %v2740_v19 = vadd.f32 %v2739_v56, %v2727_v55  ;;  %v2752_v58 = vpop.f32.mrf.mxu3  ;;  %v2728_v16 = vpop.f32.mrf.mxu1  ;;  %v4461_v57 = vmul.f32 -1.442695, %v6694_v53 }
 0x166   : > { %v4834_v62 = vpop.eup %4833 }
 0x167   : > { %v2753_v59 = vadd.f32 %v2752_v58, %v2740_v19  ;;  %v3016_v1 = vadd.f32 %v4834_v62, %v6935_v61  ;;  %v3034_v33 = vmul.f32 %v4834_v62, %v6942_v21 }
 0x169   : > { %v4463_v63 = vmul.f32 -1.442695, %v2753_v59 }
 0x16b   : > { %4835 = vpow2.f32 %v4463_v63 }
 0x16c   : > { %v2741_v30 = vpop.f32.mrf.mxu2 }
 0x16d   : > { %v2754_v2 = vpop.f32.mrf.mxu3 }
 0x171   : > { %v4836_v3 = vpop.eup %4835 }
 0x172   : > { %v2972_v18 = vadd.f32 1.0, %v4836_v3 }
 0x174   : > { %4837 = vrcp.f32 %v2972_v18  ;;  %v2984_v7 = vand.u32 2147483648, %v2972_v18  ;;  %vm2978_vm10 = vweird.f32 %v2972_v18  ;;  %v2982_v10 = vand.u32 2147483647, %v2972_v18 }
 0x176   : > { %v2985_v12 = vor.u32 1.1754944e-38, %v2984_v7  ;;  %vm2983_vm13 = vcmp.eq.f32.partialorder %v2982_v10, 8.507059e+37 }
 0x17a   : > { %v4838_v4 = vpop.eup %4837 }
 0x17b   : > { %v2974_v5 = vmul.f32 %v4838_v4, %v2972_v18  ;;  %vm2979_vm11 = vweird.f32 %v4838_v4 }
 0x17c   : > { %v2765_v6 = vpop.f32.mrf.mxu0  ;;  %vm2980_vm12 = vmor %vm2978_vm10, %vm2979_vm11 }
 0x17d   : > { %v2778_v8 = vpop.f32.mrf.mxu1  ;;  %v2975_v9 = vsub.f32 1.0, %v2974_v5  ;;  %v2766_v24 = vadd.f32 %v2765_v6, %v996_v22 }
 0x17f   : > { %v2976_v11 = vmul.f32 %v4838_v4, %v2975_v9  ;;  %v2779_v36 = vadd.f32 %v2778_v8, %v2766_v24 }
 0x181   : > { %v2977_v13 = vadd.f32 %v4838_v4, %v2976_v11 }
 0x183   : > { %v2981_v32 = vsel %vm2980_vm12, %v4838_v4, %v2977_v13  ;;  %v4822_v13 = vld [vmem:[%s658_s17] ss:$0 sm:$0xff]  ;;  %s599_s17 = scalar_lea.vmem [#allocation4], %s7067_s25 }
 0x184   : > { %v2767_v35 = vpop.f32.mrf.mxu0  ;;  %v2791_v14 = vpop.f32.mrf.mxu2  ;;  %v2986_v40 = vsel %vm2983_vm13, %v2985_v12, %v2981_v32  ;;  %v691_v12 = vrot.slane %v6942_v21, 1  ;;  %s3080_s18 = sshll.u32 %s599_s17, 4  ;;  %s3081_s18 = int_to_ptr.vmem [resolvable:$true] %s3080_s18 }
 0x185   : > { %v2780_v15 = vpop.f32.mrf.mxu1  ;;  %v2804_v17 = vpop.f32.mrf.mxu3  ;;  %v3012_v20 = vmul.f32 1.442695, %v2986_v40  ;;  %v2792_v38 = vadd.f32 %v2791_v14, %v2779_v36 }
 0x186   : > { %v695_v15 = vsel %vm671_vm1, %v4822_v13, %v691_v12 }
 0x187   : > { %4839 = vpow2.f32 %v3012_v20  ;;  %v2805_v39 = vadd.f32 %v2804_v17, %v2792_v38 }
 0x18c   : > { %v2793_v25 = vpop.f32.mrf.mxu2 }
 0x18d   : > { %v2806_v27 = vpop.f32.mrf.mxu3  ;;  %v4840_v28 = vpop.eup %4839 }
 0x18e   : > { %v3017_v29 = vadd.f32 %v4840_v28, %v3016_v1  ;;  %v3035_v34 = vmul.f32 %v4840_v28, %v690_v26 }
 0x190   : > { %v6954_v37 = vadd.f32 %v3035_v34, %v3034_v33 }
 0x19c   : > { %v2817_v41 = vpop.f32.mrf.mxu0 }
 0x19d   : > { %v2830_v42 = vpop.f32.mrf.mxu1  ;;  %v2818_v43 = vadd.f32 %v2817_v41, %v2805_v39 }
 0x19f   : > { %v2831_v44 = vadd.f32 %v2830_v42, %v2818_v43 }
 0x1a1   : > { %v4464_v45 = vmul.f32 -1.442695, %v2831_v44 }
 0x1a3   : > { %4841 = vpow2.f32 %v4464_v45 }
 0x1a4   : > { %v2819_v46 = vpop.f32.mrf.mxu0  ;;  %v2843_v48 = vpop.f32.mrf.mxu2 }
 0x1a5   : > { %v2832_v47 = vpop.f32.mrf.mxu1  ;;  %v2856_v49 = vpop.f32.mrf.mxu3  ;;  %v2844_v56 = vadd.f32 %v2843_v48, %v997_v52 }
 0x1a7   : > { %v2857_v16 = vadd.f32 %v2856_v49, %v2844_v56 }
 0x1a9   : > { %v4842_v50 = vpop.eup %4841 }
 0x1aa   : > { %v2991_v51 = vadd.f32 1.0, %v4842_v50 }
 0x1ac   : > { %4843 = vrcp.f32 %v2991_v51  ;;  %v2845_v54 = vpop.f32.mrf.mxu2  ;;  %v3003_v62 = vand.u32 2147483648, %v2991_v51  ;;  %v3001_v1 = vand.u32 2147483647, %v2991_v51  ;;  %vm2997_vm15 = vweird.f32 %v2991_v51 }
 0x1ad   : > { %v2858_v55 = vpop.f32.mrf.mxu3  ;;  %4845 = vpow2.f32 %v4461_v57 }
 0x1ae   : > { %v3004_v18 = vor.u32 1.1754944e-38, %v3003_v62  ;;  %vm3002_vm2 = vcmp.eq.f32.partialorder %v3001_v1, 8.507059e+37 }
 0x1b2   : > { %v4844_v19 = vpop.eup %4843 }
 0x1b3   : > { %v2993_v58 = vmul.f32 %v4844_v19, %v2991_v51  ;;  %vm2998_vm14 = vweird.f32 %v4844_v19  ;;  %v4846_v53 = vpop.eup %4845 }
 0x1b4   : > { %vm2999_vm0 = vmor %vm2997_vm15, %vm2998_vm14  ;;  %v6958_v8 = vadd.f32 1.0, %v4846_v53 }
 0x1b5   : > { %v2994_v59 = vsub.f32 1.0, %v2993_v58 }
 0x1b6   : > { %vm2940_vm6 = vweird.f32 %v6958_v8  ;;  %v2946_v44 = vand.u32 2147483648, %v6958_v8  ;;  %v2944_v46 = vand.u32 2147483647, %v6958_v8 }
 0x1b7   : > { %v2995_v63 = vmul.f32 %v4844_v19, %v2994_v59 }
 0x1b9   : > { %v2996_v2 = vadd.f32 %v4844_v19, %v2995_v63 }
 0x1bb   : > { %v3000_v4 = vsel %vm2999_vm0, %v4844_v19, %v2996_v2 }
 0x1bc   : > { %v2869_v30 = vpop.f32.mrf.mxu0  ;;  %v3005_v5 = vsel %vm3002_vm2, %v3004_v18, %v3000_v4 }
 0x1bd   : > { %v2870_v3 = vadd.f32 %v2869_v30, %v2857_v16  ;;  %v2882_v31 = vpop.f32.mrf.mxu1  ;;  %v3014_v6 = vmul.f32 1.442695, %v3005_v5 }
 0x1bf   : > { %v2883_v7 = vadd.f32 %v2882_v31, %v2870_v3  ;;  %4847 = vpow2.f32 %v3014_v6 }
 0x1c0   : > { %4849 = vrcp.f32 %v6958_v8 }
 0x1c4   : > { %v2895_v9 = vpop.f32.mrf.mxu2  ;;  %v2871_v10 = vpop.f32.mrf.mxu0 }
 0x1c5   : > { %v2896_v11 = vadd.f32 %v2895_v9, %v2883_v7  ;;  %v2884_v32 = vpop.f32.mrf.mxu1  ;;  %v2908_v35 = vpop.f32.mrf.mxu3 }
 0x1c6   : > { %v4848_v40 = vpop.eup %4847 }
 0x1c7   : > { %v2909_v14 = vadd.f32 %v2908_v35, %v2896_v11  ;;  %v3018_v17 = vadd.f32 %v4848_v40, %v3017_v29  ;;  %v3037_v20 = vmul.f32 %v4848_v40, %v695_v15  ;;  %v6969_v22 = vpop.eup %4849 }
 0x1c8   : > { %v2936_v0 = vmul.f32 %v6969_v22, %v6958_v8  ;;  %vm2941_vm7 = vweird.f32 %v6969_v22 }
 0x1c9   : > { %4851 = vtanh.f32 %v2909_v14  ;;  %v3038_v24 = vadd.f32 %v3037_v20, %v6954_v37  ;;  %v3030_v34 = vand.u32 2147483648, %v3018_v17  ;;  %v3028_v37 = vand.u32 2147483647, %v3018_v17  ;;  %vm6993_vm8 = vmor %vm2940_vm6, %vm2941_vm7 }
 0x1ca   : > { %4853 = vrcp.f32 %v3018_v17  ;;  %v2937_v33 = vsub.f32 1.0, %v2936_v0  ;;  %vm3024_vm3 = vweird.f32 %v3018_v17 }
 0x1cb   : > { %v3031_v38 = vor.u32 1.1754944e-38, %v3030_v34  ;;  %vm3029_vm5 = vcmp.eq.f32.partialorder %v3028_v37, 8.507059e+37 }
 0x1cc   : > { %v2897_v21 = vpop.f32.mrf.mxu2  ;;  %v2938_v39 = vmul.f32 %v6969_v22, %v2937_v33 }
 0x1cd   : > { %v2910_v23 = vpop.f32.mrf.mxu3 }
 0x1ce   : > { %v2939_v45 = vadd.f32 %v6969_v22, %v2938_v39 }
 0x1cf   : > { %v4852_v60 = vpop.eup %4851 }
 0x1d0   : > { %v3039_v25 = vmul.f32 %v4852_v60, %v6935_v61  ;;  %v4854_v26 = vpop.eup %4853 }
 0x1d1   : > { %v3020_v28 = vmul.f32 %v4854_v26, %v3018_v17  ;;  %vm3025_vm1 = vweird.f32 %v4854_v26 }
 0x1d2   : > { %v3040_v27 = vadd.f32 %v3039_v25, %v3038_v24  ;;  %vm3026_vm4 = vmor %vm3024_vm3, %vm3025_vm1 }
 0x1d3   : > { %v3021_v29 = vsub.f32 1.0, %v3020_v28 }
 0x1d5   : > { %v3022_v36 = vmul.f32 %v4854_v26, %v3021_v29 }
 0x1d7   : > { %v3023_v61 = vadd.f32 %v4854_v26, %v3022_v36 }
 0x1d9   : > { %v3027_v41 = vsel %vm3026_vm4, %v4854_v26, %v3023_v61 }
 0x1da   : > { %v3032_v42 = vsel %vm3029_vm5, %v3031_v38, %v3027_v41 }
 0x1db   : > { %v3041_v43 = vmul.f32 %v3040_v27, %v3032_v42 }
 0x1dd   : > { %4855 = vtanh.f32 %v3041_v43  ;;  %3042 = vst [vmem:[%s599_s17] sm:$0xff] %v3041_v43 }
 0x1de   : > { %4885 = shalt.err (!%p4882_p5)
}
 0x1df   : > { %4760 = dma.vmem_to_hbm [thread:$0]  (%p5075_p4), %s3081_s18, 128, %s3083_s19, %s3052_s27   ;;  %v2947_v48 = vor.u32 1.1754944e-38, %v2946_v44  ;;  %v2943_v49 = vsel %vm6993_vm8, %v6969_v22, %v2939_v45  ;;  %vm2945_vm9 = vcmp.eq.f32.partialorder %v2944_v46, 8.507059e+37 }
 0x1e0   : > { %s7084_s24 = sshll.u32 %s6976_s23, 3  ;;  %s3067_s17 = sshll.u32 %s3063_s20, 4  ;;  %s3068_s17 = int_to_ptr.hbm [resolvable:$true] %s3067_s17 }
 0x1e1   : > { %s592_s29 = scalar_lea.vmem [#allocation2], %s7084_s24  ;;  %v2948_v51 = vsel %vm2945_vm9, %v2947_v48, %v2943_v49  ;;  %s3047_s5 = scalar_lea.sflag [#allocation3], %s6976_s23 }
 0x1e2   : > { %s3065_s25 = sshll.u32 %s592_s29, 4  ;;  %s4900_s0 = sshra.s32 %s3068_s17, 4  ;;  %s3066_s25 = int_to_ptr.vmem [resolvable:$true] %s3065_s25  ;;  %s4901_s0 = int_to_ptr.hbm [resolvable:$true] %s4900_s0 }
 0x1e3   : > { %v4856_v50 = vpop.eup %4855  ;;  %s4902_s18 = scalar_lea.hbm %s4901_s0, 8  ;;  %s4906_s2 = scalar_lea.hbm %s7062_s11, 16 }
 0x1e4   : > { %v3044_v52 = vmul.f32 %v4856_v50, %v2948_v51  ;;  %p4903_p6 = scmp.ne.s32.totalorder %s4901_s0, %s4902_s18  ;;  %p4907_p10 = scmp.lt.s32.totalorder %s4901_s0, %s7062_s11 }
 0x1e5   : > { %p4908_p11 = scmp.lt.s32.totalorder %s4906_s2, %s4902_s18 }
 0x1e6   : > { %3045 = vst [vmem:[%s592_s29] sm:$0xff] %v3044_v52  ;;  %p4904_p7 = pnand %p4903_p6, %p5075_p4 }
 0x1e7   : > { %p4909_p12 = por %p4908_p11, %p4907_p10 }
 0x1e8   : > { %p4905_p9 = pneg %p4904_p7 }
 0x1ea   : > { %p4910_p13 = pnand %p4909_p12, %p4905_p9 }
 0x1ec   : > { %4913 = shalt.err (!%p4910_p13)
}
 0x1ed   : > { %4759 = dma.vmem_to_hbm [thread:$0]  (%p5075_p4), %s3066_s25, 128, %s3068_s17, %s3047_s5  }
 0x1ee PF: > { %p4770_p0 = scmp.ge.s32.totalorder %s4968_s26, 2  ;;  %s3094_s23 = sand.u32 1, %s4948_s21  }
 0x1ef   : > { %s3095_s1 = scalar_lea.sflag [#allocation3], %s3094_s23 }
 0x1f0   : > { %p4764_p1 = pnand %p4770_p0, %p5082_p8 }
 0x1f2   : > { %p4765_p2 = pneg %p4764_p1 }
 0x1f4   : > { %4939 = dma.done.wait (%p4765_p2), %s3095_s1, 128  }
 0x1f5   : > { %4941 = vsyncadd (%p4765_p2), %s3095_s1, 4294967168  ;;  %s3105_s14 = scalar_lea.sflag [#allocation5], %s3094_s23 }
 0x1f6   : > { %4943 = dma.done.wait (%p4765_p2), %s3105_s14, 128  }
 0x1f7   : > { %4945 = vsyncadd (%p4765_p2), %s3105_s14, 4294967168  ;;  %s29_s26 = sadd.s32 1, %s4968_s26   ;;  %s7085_s13 = sld [smem:[#allocation8_spill]] }
 0x1f8   : > { %p26_p3 = scmp.ge.s32.totalorder %s29_s26, 4   ;;  %s7086_s23 = sld [smem:[#allocation11_spill]] }
 0x1f9   : > { %s7087_s24 = sld [smem:[#allocation9_spill]]  ;;  %s7089_s21 = smov %s4952_s22 }
 0x1fa   : > { %s7088_s25 = sld [smem:[#allocation10_spill]]  ;;  %28 = sbr.rel (!%p26_p3) target bundleno = 11 (0xb), region = 140 }
 0x1fd   : > { %s7090_s22 = smov %s7085_s13 }
 0x1ff   :  { %3111 = vsyncpa [#allocation3], 1 }
 0x200   :  { %3113 = vsyncpa [#allocation3 + $0x1], 1 }
 0x201   :  { %3114 = vsyncpa [#allocation5], 1 }
 0x202   :  { %3116 = vsyncpa [#allocation5 + $0x1], 1 }

</bundles_post_ra>
